<compile_context>
chip_gen: v7x
topology: tpu7x:2x2x1
jax: 0.10.0
libtpu: 0.0.40
codegen_flags: <defaults>
</compile_context>

<pallas_src>
import math

import jax
import jax.numpy as jnp
from jax import lax
from jax.experimental import pallas as pl
from jax.experimental.pallas import tpu as pltpu


def _round_up(x, m):
    return (x + m - 1) // m * m


def _pick_time_chunk(T, max_chunk=32):
    """Largest divisor of T that is <= max_chunk (chunk is fully unrolled in-kernel)."""
    for c in range(min(T, max_chunk), 0, -1):
        if T % c == 0:
            return c
    return 1


# ---------------------------------------------------------------------------
# Phases 1 & 3: row-tiled, lane-dense (M, K) @ (K, N) + bias
# ---------------------------------------------------------------------------
def _matmul_bias_kernel(x_ref, w_ref, b_ref, o_ref):
    o_ref[...] = (jnp.dot(x_ref[...], w_ref[...],
                          preferred_element_type=jnp.float32)
                  + b_ref[...]).astype(o_ref.dtype)


def _matmul_bias(x2d, w, b, *, row_tile=512):
    M, K = x2d.shape
    _, N = w.shape
    tm = M if M <= row_tile else row_tile
    grid_m = pl.cdiv(M, tm)
    return pl.pallas_call(
        _matmul_bias_kernel,
        grid=(grid_m,),
        in_specs=[
            pl.BlockSpec((tm, K), lambda i: (i, 0)),
            pl.BlockSpec((K, N), lambda i: (0, 0)),
            pl.BlockSpec((1, N), lambda i: (0, 0)),
        ],
        out_specs=pl.BlockSpec((tm, N), lambda i: (i, 0)),
        out_shape=jax.ShapeDtypeStruct((M, N), jnp.float32),
        compiler_params=pltpu.CompilerParams(
            dimension_semantics=("parallel",)),
    )(x2d, w, b)


# ---------------------------------------------------------------------------
# Phase 2: GRU recurrence over time chunks (hidden state resident in VMEM scratch)
# ---------------------------------------------------------------------------
def _gru_recurrence_kernel(gi_ref, whh_ref, bhhn_ref, hs_ref, h_ref):
    @pl.when(pl.program_id(0) == 0)
    def _():
        h_ref[...] = jnp.zeros_like(h_ref)

    Tc, Bp, three_hp = gi_ref.shape
    Hp = three_hp // 3

    whh = whh_ref[...]                                   # (Hp, 3Hp), loaded once per chunk
    bhh_n = jnp.broadcast_to(bhhn_ref[...], (Bp, Hp))    # hoisted broadcast (loop-invariant)

    def step(t, h):
        gi = gi_ref[t]                                   # (Bp, 3Hp) — input proj precomputed
        gh = jnp.dot(h, whh, preferred_element_type=jnp.float32)
        # Gates are lane-aligned: each occupies its own Hp (multiple-of-128) slab.
        r = jax.nn.sigmoid(gi[:, 0 * Hp:1 * Hp] + gh[:, 0 * Hp:1 * Hp])
        z = jax.nn.sigmoid(gi[:, 1 * Hp:2 * Hp] + gh[:, 1 * Hp:2 * Hp])
        n = jnp.tanh(gi[:, 2 * Hp:3 * Hp] + r * (gh[:, 2 * Hp:3 * Hp] + bhh_n))
        h_new = n + z * (h - n)                          # == (1 - z) * n + z * h
        hs_ref[t] = h_new
        return h_new

    h_ref[...] = lax.fori_loop(0, Tc, step, h_ref[...], unroll=True)


def _gru_recurrence(gi, whh_p, bhh_n, time_chunk):
    T, Bp, three_hp = gi.shape
    Hp = three_hp // 3
    n_chunks = T // time_chunk
    return pl.pallas_call(
        _gru_recurrence_kernel,
        grid=(n_chunks,),
        in_specs=[
            pl.BlockSpec((time_chunk, Bp, three_hp), lambda c: (c, 0, 0)),
            pl.BlockSpec((Hp, three_hp), lambda c: (0, 0)),
            pl.BlockSpec((1, Hp), lambda c: (0, 0)),
        ],
        out_specs=pl.BlockSpec((time_chunk, Bp, Hp), lambda c: (c, 0, 0)),
        out_shape=jax.ShapeDtypeStruct((T, Bp, Hp), jnp.float32),
        scratch_shapes=[pltpu.VMEM((Bp, Hp), jnp.float32)],   # hidden-state carry
        compiler_params=pltpu.CompilerParams(
            dimension_semantics=("arbitrary",)),              # time is strictly serial
    )(gi, whh_p, bhh_n)


# ---------------------------------------------------------------------------
# Wrapper: pad, re-lay-out gates, run the three phases, slice back.
# ---------------------------------------------------------------------------
def encoder_forward(x, params, time_chunk=None):
    """x: (T, B, I) float32 -> (T, B, O) float32."""
    T, B, I = x.shape
    wih_t = params["wih_t"]    # (I, 3H)
    whh_t = params["whh_t"]    # (H, 3H)
    bih = params["bih"]        # (1, 3H)
    bhh = params["bhh"]        # (1, 3H)
    wlin_t = params["wlin_t"]  # (H, O)
    blin = params["blin"]      # (1, O)
    H = whh_t.shape[0]
    O = wlin_t.shape[1]

    Bp = _round_up(B, 8)
    Ip = _round_up(I, 128)
    Hp = _round_up(H, 128)
    Op = _round_up(O, 128)

    # Zero-pad input to (T, Bp, Ip).
    xp = jnp.zeros((T, Bp, Ip), jnp.float32).at[:, :B, :I].set(x)

    # Re-lay-out gate weights so each gate occupies its own lane-aligned Hp slab.
    def pad_gate_w(w, rows, rows_p):
        out = jnp.zeros((rows_p, 3 * Hp), jnp.float32)
        for g in range(3):
            out = out.at[:rows, g * Hp:g * Hp + H].set(w[:, g * H:(g + 1) * H])
        return out

    def pad_gate_b(b):
        out = jnp.zeros((1, 3 * Hp), jnp.float32)
        for g in range(3):
            out = out.at[:, g * Hp:g * Hp + H].set(b[:, g * H:(g + 1) * H])
        return out

    wih_p = pad_gate_w(wih_t, I, Ip)     # (Ip, 3Hp)
    whh_p = pad_gate_w(whh_t, H, Hp)     # (Hp, 3Hp)
    bih_p = pad_gate_b(bih)              # (1, 3Hp)
    bhh_p = pad_gate_b(bhh)              # (1, 3Hp)

    # Fold b_hh of the r and z gates into the precomputed input projection bias;
    # b_hh_n must stay separate because PyTorch applies r * (W_hn h + b_hn).
    bias_gi = bih_p.at[:, :2 * Hp].add(bhh_p[:, :2 * Hp])   # (1, 3Hp)
    bhh_n = bhh_p[:, 2 * Hp:]                               # (1, Hp)

    # Phase 1: batched input projection (no sequential dependence).
    gi = _matmul_bias(xp.reshape(T * Bp, Ip), wih_p, bias_gi).reshape(T, Bp, 3 * Hp)

    # Phase 2: serial GRU recurrence.
    Tc = time_chunk if time_chunk is not None else _pick_time_chunk(T)
    hs = _gru_recurrence(gi, whh_p, bhh_n, Tc)              # (T, Bp, Hp)

    # Phase 3: batched output Linear.
    wlin_p = jnp.zeros((Hp, Op), jnp.float32).at[:H, :O].set(wlin_t)
    blin_p = jnp.zeros((1, Op), jnp.float32).at[:, :O].set(blin)
    y = _matmul_bias(hs.reshape(T * Bp, Hp), wlin_p, blin_p).reshape(T, Bp, Op)

    return y[:, :B, :O]


# ---------------------------------------------------------------------------
# Params & pure-JAX reference
# ---------------------------------------------------------------------------
def init_params(key, input_size, hidden_size, output_size):
    """Deterministic init mirroring PyTorch's default uniform(-1/sqrt(H), 1/sqrt(H))."""
    ks = jax.random.split(key, 6)
    k = 1.0 / math.sqrt(hidden_size)
    wih = jax.random.uniform(ks[0], (3 * hidden_size, input_size), minval=-k, maxval=k,
                             dtype=jnp.float32)
    whh = jax.random.uniform(ks[1], (3 * hidden_size, hidden_size), minval=-k, maxval=k,
                             dtype=jnp.float32)
    bih = jax.random.uniform(ks[2], (3 * hidden_size,), minval=-k, maxval=k, dtype=jnp.float32)
    bhh = jax.random.uniform(ks[3], (3 * hidden_size,), minval=-k, maxval=k, dtype=jnp.float32)
    wlin = jax.random.uniform(ks[4], (output_size, hidden_size), minval=-k, maxval=k,
                              dtype=jnp.float32)
    blin = jax.random.uniform(ks[5], (output_size,), minval=-k, maxval=k, dtype=jnp.float32)
    return {
        "wih_t": wih.T,          # (I, 3H)
        "whh_t": whh.T,          # (H, 3H)
        "bih": bih[None, :],     # (1, 3H)
        "bhh": bhh[None, :],     # (1, 3H)
        "wlin_t": wlin.T,        # (H, O)
        "blin": blin[None, :],   # (1, O)
    }


def encoder_reference(x, params):
    """Pure-JAX reference (lax.scan GRU, PyTorch gate order r,z,n)."""
    H = params["whh_t"].shape[0]

    def step(h, x_t):
        gi = x_t @ params["wih_t"] + params["bih"]
        gh = h @ params["whh_t"] + params["bhh"]
        r = jax.nn.sigmoid(gi[:, :H] + gh[:, :H])
        z = jax.nn.sigmoid(gi[:, H:2 * H] + gh[:, H:2 * H])
        n = jnp.tanh(gi[:, 2 * H:] + r * gh[:, 2 * H:])
        h_new = (1.0 - z) * n + z * h
        return h_new, h_new

    B = x.shape[1]
    h0 = jnp.zeros((B, H), jnp.float32)
    _, hs = lax.scan(step, h0, x)
    return hs @ params["wlin_t"] + params["blin"]


if __name__ == "__main__":
    seq_len, batch, input_size, hidden_size, output_size = 8, 4, 16, 32, 8

    key = jax.random.PRNGKey(0)
    k_x, k_p = jax.random.split(key)
    x = jax.random.normal(k_x, (seq_len, batch, input_size), dtype=jnp.float32)
    params = init_params(k_p, input_size, hidden_size, output_size)

    fwd = jax.jit(encoder_forward)
    out = jax.block_until_ready(fwd(x, params))

    ref = encoder_reference(x, params)
    assert out.shape == (seq_len, batch, output_size)
    assert jnp.allclose(out, ref, rtol=1e-5, atol=1e-5), "Pallas output mismatch vs reference"

    print("KERNEL_OK")
</pallas_src>

<mosaic_0001>
module attributes {stable_mosaic.version = 11 : i64} {
  func.func @_matmul_bias_kernel(%arg0: i32, %arg1: memref<64x128xf32, #tpu.memory_space<vmem>>, %arg2: memref<128x384xf32, #tpu.memory_space<vmem>>, %arg3: memref<1x384xf32, #tpu.memory_space<vmem>>, %arg4: memref<64x384xf32, #tpu.memory_space<vmem>>) attributes {dimension_semantics = [#tpu.dimension_semantics<parallel>], iteration_bounds = array<i64: 1>, scalar_prefetch = 0 : i64, scratch_operands = 0 : i64, tpu.core_type = #tpu.core_type<tc>, window_params = [{transform_indices = @transform_0, window_bounds = array<i64: 64, 128>}, {pipeline_mode = #tpu.pipeline_mode<synchronous>, transform_indices = @transform_1, window_bounds = array<i64: 128, 384>}, {pipeline_mode = #tpu.pipeline_mode<synchronous>, transform_indices = @transform_2, window_bounds = array<i64: 1, 384>}, {transform_indices = @transform_3, window_bounds = array<i64: 64, 384>}]} {
    %c0 = arith.constant 0 : index
    %c0_0 = arith.constant 0 : index
    %0 = vector.load %arg1[%c0, %c0_0] : memref<64x128xf32, #tpu.memory_space<vmem>>, vector<64x128xf32>
    %c0_1 = arith.constant 0 : index
    %c0_2 = arith.constant 0 : index
    %1 = vector.load %arg2[%c0_1, %c0_2] : memref<128x384xf32, #tpu.memory_space<vmem>>, vector<128x384xf32>
    %cst = arith.constant dense<0.000000e+00> : vector<64x384xf32>
    %2 = tpu.matmul %0, %1, %cst {dimension_numbers = #tpu.dot_dimension_numbers<[1], [0], [0], [1], [0, 0, 1, 1], [], []>} : vector<64x128xf32>, vector<128x384xf32>, vector<64x384xf32> -> vector<64x384xf32>
    %c0_3 = arith.constant 0 : index
    %c0_4 = arith.constant 0 : index
    %3 = vector.load %arg3[%c0_3, %c0_4] : memref<1x384xf32, #tpu.memory_space<vmem>>, vector<1x384xf32>
    %4 = vector.broadcast %3 : vector<1x384xf32> to vector<64x384xf32>
    %5 = arith.addf %2, %4 : vector<64x384xf32>
    %c0_5 = arith.constant 0 : index
    %c0_6 = arith.constant 0 : index
    %6 = vector.load %arg4[%c0_5, %c0_6] : memref<64x384xf32, #tpu.memory_space<vmem>>, vector<64x384xf32>
    tpu.vector_store %arg4[%c0_5, %c0_6], %5 {strides = array<i32>} : memref<64x384xf32, #tpu.memory_space<vmem>>, vector<64x384xf32>,
    return
  }
  func.func @transform_0(%arg0: i32) -> (i32, i32) {
    %c0_i32 = arith.constant 0 : i32
    %c0_i32_0 = arith.constant 0 : i32
    return %arg0, %c0_i32 : i32, i32
  }
  func.func @transform_1(%arg0: i32) -> (i32, i32) {
    %c0_i32 = arith.constant 0 : i32
    %c0_i32_0 = arith.constant 0 : i32
    %c0_i32_1 = arith.constant 0 : i32
    return %c0_i32, %c0_i32_0 : i32, i32
  }
  func.func @transform_2(%arg0: i32) -> (i32, i32) {
    %c0_i32 = arith.constant 0 : i32
    %c0_i32_0 = arith.constant 0 : i32
    %c0_i32_1 = arith.constant 0 : i32
    return %c0_i32, %c0_i32_0 : i32, i32
  }
  func.func @transform_3(%arg0: i32) -> (i32, i32) {
    %c0_i32 = arith.constant 0 : i32
    %c0_i32_0 = arith.constant 0 : i32
    return %arg0, %c0_i32 : i32, i32
  }
}

module attributes {stable_mosaic.version = 11 : i64} {
  func.func @_gru_recurrence_kernel(%arg0: i32, %arg1: memref<8x8x384xf32, #tpu.memory_space<vmem>>, %arg2: memref<128x384xf32, #tpu.memory_space<vmem>>, %arg3: memref<1x128xf32, #tpu.memory_space<vmem>>, %arg4: memref<8x8x128xf32, #tpu.memory_space<vmem>>, %arg5: memref<8x128xf32, #tpu.memory_space<vmem>>) attributes {dimension_semantics = [#tpu.dimension_semantics<arbitrary>], iteration_bounds = array<i64: 1>, scalar_prefetch = 0 : i64, scratch_operands = 1 : i64, tpu.core_type = #tpu.core_type<tc>, window_params = [{transform_indices = @transform_0, window_bounds = array<i64: 8, 8, 384>}, {pipeline_mode = #tpu.pipeline_mode<synchronous>, transform_indices = @transform_1, window_bounds = array<i64: 128, 384>}, {pipeline_mode = #tpu.pipeline_mode<synchronous>, transform_indices = @transform_2, window_bounds = array<i64: 1, 128>}, {transform_indices = @transform_3, window_bounds = array<i64: 8, 8, 128>}]} {
    %c0_i32 = arith.constant 0 : i32
    %0 = arith.cmpi eq, %arg0, %c0_i32 : i32
    %1 = arith.extui %0 : i1 to i32
    %c0_i32_0 = arith.constant 0 : i32
    %2 = arith.cmpi ne, %1, %c0_i32_0 : i32
    scf.if %2 {
      %cst_64 = arith.constant 0.000000e+00 : f32
      %273 = vector.broadcast %cst_64 : f32 to vector<8x128xf32>
      %c0_65 = arith.constant 0 : index
      %c0_66 = arith.constant 0 : index
      %274 = vector.load %arg5[%c0_65, %c0_66] : memref<8x128xf32, #tpu.memory_space<vmem>>, vector<8x128xf32>
      tpu.vector_store %arg5[%c0_65, %c0_66], %273 {strides = array<i32>} : memref<8x128xf32, #tpu.memory_space<vmem>>, vector<8x128xf32>,
    } else {
    }
    %c0 = arith.constant 0 : index
    %c0_1 = arith.constant 0 : index
    %3 = vector.load %arg2[%c0, %c0_1] : memref<128x384xf32, #tpu.memory_space<vmem>>, vector<128x384xf32>
    %c0_2 = arith.constant 0 : index
    %c0_3 = arith.constant 0 : index
    %4 = vector.load %arg3[%c0_2, %c0_3] : memref<1x128xf32, #tpu.memory_space<vmem>>, vector<1x128xf32>
    %5 = vector.shape_cast %4 : vector<1x128xf32> to vector<1x128xf32>
    %6 = vector.broadcast %5 : vector<1x128xf32> to vector<8x128xf32>
    %c0_4 = arith.constant 0 : index
    %c0_5 = arith.constant 0 : index
    %7 = vector.load %arg5[%c0_4, %c0_5] : memref<8x128xf32, #tpu.memory_space<vmem>>, vector<8x128xf32>
    %c0_i32_6 = arith.constant 0 : i32
    %8 = arith.index_cast %c0_i32_6 : i32 to index
    %c0_7 = arith.constant 0 : index
    %c0_8 = arith.constant 0 : index
    %9 = vector.load %arg1[%8, %c0_7, %c0_8] : memref<8x8x384xf32, #tpu.memory_space<vmem>>, vector<1x8x384xf32>
    %10 = vector.shape_cast %9 : vector<1x8x384xf32> to vector<8x384xf32>
    %cst = arith.constant dense<0.000000e+00> : vector<8x384xf32>
    %11 = tpu.matmul %7, %3, %cst {dimension_numbers = #tpu.dot_dimension_numbers<[1], [0], [0], [1], [0, 0, 1, 1], [], []>} : vector<8x128xf32>, vector<128x384xf32>, vector<8x384xf32> -> vector<8x384xf32>
    %12 = vector.extract_strided_slice %10 {offsets = [0, 0], sizes = [8, 128], strides = [1, 1]} : vector<8x384xf32> to vector<8x128xf32>
    %13 = vector.extract_strided_slice %11 {offsets = [0, 0], sizes = [8, 128], strides = [1, 1]} : vector<8x384xf32> to vector<8x128xf32>
    %14 = arith.addf %12, %13 : vector<8x128xf32>
    %15 = arith.negf %14 : vector<8x128xf32>
    %16 = math.exp %15 : vector<8x128xf32>
    %cst_9 = arith.constant 1.000000e+00 : f32
    %17 = vector.broadcast %cst_9 : f32 to vector<8x128xf32>
    %18 = arith.addf %17, %16 : vector<8x128xf32>
    %19 = arith.divf %17, %18 : vector<8x128xf32>
    %20 = vector.extract_strided_slice %10 {offsets = [0, 128], sizes = [8, 128], strides = [1, 1]} : vector<8x384xf32> to vector<8x128xf32>
    %21 = vector.extract_strided_slice %11 {offsets = [0, 128], sizes = [8, 128], strides = [1, 1]} : vector<8x384xf32> to vector<8x128xf32>
    %22 = arith.addf %20, %21 : vector<8x128xf32>
    %23 = arith.negf %22 : vector<8x128xf32>
    %24 = math.exp %23 : vector<8x128xf32>
    %cst_10 = arith.constant 1.000000e+00 : f32
    %25 = vector.broadcast %cst_10 : f32 to vector<8x128xf32>
    %26 = arith.addf %25, %24 : vector<8x128xf32>
    %27 = arith.divf %25, %26 : vector<8x128xf32>
    %28 = vector.extract_strided_slice %10 {offsets = [0, 256], sizes = [8, 128], strides = [1, 1]} : vector<8x384xf32> to vector<8x128xf32>
    %29 = vector.extract_strided_slice %11 {offsets = [0, 256], sizes = [8, 128], strides = [1, 1]} : vector<8x384xf32> to vector<8x128xf32>
    %30 = arith.addf %29, %6 : vector<8x128xf32>
    %31 = arith.mulf %19, %30 : vector<8x128xf32>
    %32 = arith.addf %28, %31 : vector<8x128xf32>
    %33 = math.tanh %32 : vector<8x128xf32>
    %34 = arith.subf %7, %33 : vector<8x128xf32>
    %35 = arith.mulf %27, %34 : vector<8x128xf32>
    %36 = arith.addf %33, %35 : vector<8x128xf32>
    %37 = arith.index_cast %c0_i32_6 : i32 to index
    %c0_11 = arith.constant 0 : index
    %c0_12 = arith.constant 0 : index
    %38 = vector.load %arg4[%37, %c0_11, %c0_12] : memref<8x8x128xf32, #tpu.memory_space<vmem>>, vector<1x8x128xf32>
    %39 = vector.shape_cast %38 : vector<1x8x128xf32> to vector<8x128xf32>
    %40 = vector.shape_cast %36 : vector<8x128xf32> to vector<1x8x128xf32>
    tpu.vector_store %arg4[%37, %c0_11, %c0_12], %40 {strides = array<i32>} : memref<8x8x128xf32, #tpu.memory_space<vmem>>, vector<1x8x128xf32>,
    %c1_i32 = arith.constant 1 : i32
    %41 = arith.index_cast %c1_i32 : i32 to index
    %c0_13 = arith.constant 0 : index
    %c0_14 = arith.constant 0 : index
    %42 = vector.load %arg1[%41, %c0_13, %c0_14] : memref<8x8x384xf32, #tpu.memory_space<vmem>>, vector<1x8x384xf32>
    %43 = vector.shape_cast %42 : vector<1x8x384xf32> to vector<8x384xf32>
    %cst_15 = arith.constant dense<0.000000e+00> : vector<8x384xf32>
    %44 = tpu.matmul %36, %3, %cst_15 {dimension_numbers = #tpu.dot_dimension_numbers<[1], [0], [0], [1], [0, 0, 1, 1], [], []>} : vector<8x128xf32>, vector<128x384xf32>, vector<8x384xf32> -> vector<8x384xf32>
    %45 = vector.extract_strided_slice %43 {offsets = [0, 0], sizes = [8, 128], strides = [1, 1]} : vector<8x384xf32> to vector<8x128xf32>
    %46 = vector.extract_strided_slice %44 {offsets = [0, 0], sizes = [8, 128], strides = [1, 1]} : vector<8x384xf32> to vector<8x128xf32>
    %47 = arith.addf %45, %46 : vector<8x128xf32>
    %48 = arith.negf %47 : vector<8x128xf32>
    %49 = math.exp %48 : vector<8x128xf32>
    %cst_16 = arith.constant 1.000000e+00 : f32
    %50 = vector.broadcast %cst_16 : f32 to vector<8x128xf32>
    %51 = arith.addf %50, %49 : vector<8x128xf32>
    %52 = arith.divf %50, %51 : vector<8x128xf32>
    %53 = vector.extract_strided_slice %43 {offsets = [0, 128], sizes = [8, 128], strides = [1, 1]} : vector<8x384xf32> to vector<8x128xf32>
    %54 = vector.extract_strided_slice %44 {offsets = [0, 128], sizes = [8, 128], strides = [1, 1]} : vector<8x384xf32> to vector<8x128xf32>
    %55 = arith.addf %53, %54 : vector<8x128xf32>
    %56 = arith.negf %55 : vector<8x128xf32>
    %57 = math.exp %56 : vector<8x128xf32>
    %cst_17 = arith.constant 1.000000e+00 : f32
    %58 = vector.broadcast %cst_17 : f32 to vector<8x128xf32>
    %59 = arith.addf %58, %57 : vector<8x128xf32>
    %60 = arith.divf %58, %59 : vector<8x128xf32>
    %61 = vector.extract_strided_slice %43 {offsets = [0, 256], sizes = [8, 128], strides = [1, 1]} : vector<8x384xf32> to vector<8x128xf32>
    %62 = vector.extract_strided_slice %44 {offsets = [0, 256], sizes = [8, 128], strides = [1, 1]} : vector<8x384xf32> to vector<8x128xf32>
    %63 = arith.addf %62, %6 : vector<8x128xf32>
    %64 = arith.mulf %52, %63 : vector<8x128xf32>
    %65 = arith.addf %61, %64 : vector<8x128xf32>
    %66 = math.tanh %65 : vector<8x128xf32>
    %67 = arith.subf %36, %66 : vector<8x128xf32>
    %68 = arith.mulf %60, %67 : vector<8x128xf32>
    %69 = arith.addf %66, %68 : vector<8x128xf32>
    %70 = arith.index_cast %c1_i32 : i32 to index
    %c0_18 = arith.constant 0 : index
    %c0_19 = arith.constant 0 : index
    %71 = vector.load %arg4[%70, %c0_18, %c0_19] : memref<8x8x128xf32, #tpu.memory_space<vmem>>, vector<1x8x128xf32>
    %72 = vector.shape_cast %71 : vector<1x8x128xf32> to vector<8x128xf32>
    %73 = vector.shape_cast %69 : vector<8x128xf32> to vector<1x8x128xf32>
    tpu.vector_store %arg4[%70, %c0_18, %c0_19], %73 {strides = array<i32>} : memref<8x8x128xf32, #tpu.memory_space<vmem>>, vector<1x8x128xf32>,
    %c2_i32 = arith.constant 2 : i32
    %74 = arith.index_cast %c2_i32 : i32 to index
    %c0_20 = arith.constant 0 : index
    %c0_21 = arith.constant 0 : index
    %75 = vector.load %arg1[%74, %c0_20, %c0_21] : memref<8x8x384xf32, #tpu.memory_space<vmem>>, vector<1x8x384xf32>
    %76 = vector.shape_cast %75 : vector<1x8x384xf32> to vector<8x384xf32>
    %cst_22 = arith.constant dense<0.000000e+00> : vector<8x384xf32>
    %77 = tpu.matmul %69, %3, %cst_22 {dimension_numbers = #tpu.dot_dimension_numbers<[1], [0], [0], [1], [0, 0, 1, 1], [], []>} : vector<8x128xf32>, vector<128x384xf32>, vector<8x384xf32> -> vector<8x384xf32>
    %78 = vector.extract_strided_slice %76 {offsets = [0, 0], sizes = [8, 128], strides = [1, 1]} : vector<8x384xf32> to vector<8x128xf32>
    %79 = vector.extract_strided_slice %77 {offsets = [0, 0], sizes = [8, 128], strides = [1, 1]} : vector<8x384xf32> to vector<8x128xf32>
    %80 = arith.addf %78, %79 : vector<8x128xf32>
    %81 = arith.negf %80 : vector<8x128xf32>
    %82 = math.exp %81 : vector<8x128xf32>
    %cst_23 = arith.constant 1.000000e+00 : f32
    %83 = vector.broadcast %cst_23 : f32 to vector<8x128xf32>
    %84 = arith.addf %83, %82 : vector<8x128xf32>
    %85 = arith.divf %83, %84 : vector<8x128xf32>
    %86 = vector.extract_strided_slice %76 {offsets = [0, 128], sizes = [8, 128], strides = [1, 1]} : vector<8x384xf32> to vector<8x128xf32>
    %87 = vector.extract_strided_slice %77 {offsets = [0, 128], sizes = [8, 128], strides = [1, 1]} : vector<8x384xf32> to vector<8x128xf32>
    %88 = arith.addf %86, %87 : vector<8x128xf32>
    %89 = arith.negf %88 : vector<8x128xf32>
    %90 = math.exp %89 : vector<8x128xf32>
    %cst_24 = arith.constant 1.000000e+00 : f32
    %91 = vector.broadcast %cst_24 : f32 to vector<8x128xf32>
    %92 = arith.addf %91, %90 : vector<8x128xf32>
    %93 = arith.divf %91, %92 : vector<8x128xf32>
    %94 = vector.extract_strided_slice %76 {offsets = [0, 256], sizes = [8, 128], strides = [1, 1]} : vector<8x384xf32> to vector<8x128xf32>
    %95 = vector.extract_strided_slice %77 {offsets = [0, 256], sizes = [8, 128], strides = [1, 1]} : vector<8x384xf32> to vector<8x128xf32>
    %96 = arith.addf %95, %6 : vector<8x128xf32>
    %97 = arith.mulf %85, %96 : vector<8x128xf32>
    %98 = arith.addf %94, %97 : vector<8x128xf32>
    %99 = math.tanh %98 : vector<8x128xf32>
    %100 = arith.subf %69, %99 : vector<8x128xf32>
    %101 = arith.mulf %93, %100 : vector<8x128xf32>
    %102 = arith.addf %99, %101 : vector<8x128xf32>
    %103 = arith.index_cast %c2_i32 : i32 to index
    %c0_25 = arith.constant 0 : index
    %c0_26 = arith.constant 0 : index
    %104 = vector.load %arg4[%103, %c0_25, %c0_26] : memref<8x8x128xf32, #tpu.memory_space<vmem>>, vector<1x8x128xf32>
    %105 = vector.shape_cast %104 : vector<1x8x128xf32> to vector<8x128xf32>
    %106 = vector.shape_cast %102 : vector<8x128xf32> to vector<1x8x128xf32>
    tpu.vector_store %arg4[%103, %c0_25, %c0_26], %106 {strides = array<i32>} : memref<8x8x128xf32, #tpu.memory_space<vmem>>, vector<1x8x128xf32>,
    %c3_i32 = arith.constant 3 : i32
    %107 = arith.index_cast %c3_i32 : i32 to index
    %c0_27 = arith.constant 0 : index
    %c0_28 = arith.constant 0 : index
    %108 = vector.load %arg1[%107, %c0_27, %c0_28] : memref<8x8x384xf32, #tpu.memory_space<vmem>>, vector<1x8x384xf32>
    %109 = vector.shape_cast %108 : vector<1x8x384xf32> to vector<8x384xf32>
    %cst_29 = arith.constant dense<0.000000e+00> : vector<8x384xf32>
    %110 = tpu.matmul %102, %3, %cst_29 {dimension_numbers = #tpu.dot_dimension_numbers<[1], [0], [0], [1], [0, 0, 1, 1], [], []>} : vector<8x128xf32>, vector<128x384xf32>, vector<8x384xf32> -> vector<8x384xf32>
    %111 = vector.extract_strided_slice %109 {offsets = [0, 0], sizes = [8, 128], strides = [1, 1]} : vector<8x384xf32> to vector<8x128xf32>
    %112 = vector.extract_strided_slice %110 {offsets = [0, 0], sizes = [8, 128], strides = [1, 1]} : vector<8x384xf32> to vector<8x128xf32>
    %113 = arith.addf %111, %112 : vector<8x128xf32>
    %114 = arith.negf %113 : vector<8x128xf32>
    %115 = math.exp %114 : vector<8x128xf32>
    %cst_30 = arith.constant 1.000000e+00 : f32
    %116 = vector.broadcast %cst_30 : f32 to vector<8x128xf32>
    %117 = arith.addf %116, %115 : vector<8x128xf32>
    %118 = arith.divf %116, %117 : vector<8x128xf32>
    %119 = vector.extract_strided_slice %109 {offsets = [0, 128], sizes = [8, 128], strides = [1, 1]} : vector<8x384xf32> to vector<8x128xf32>
    %120 = vector.extract_strided_slice %110 {offsets = [0, 128], sizes = [8, 128], strides = [1, 1]} : vector<8x384xf32> to vector<8x128xf32>
    %121 = arith.addf %119, %120 : vector<8x128xf32>
    %122 = arith.negf %121 : vector<8x128xf32>
    %123 = math.exp %122 : vector<8x128xf32>
    %cst_31 = arith.constant 1.000000e+00 : f32
    %124 = vector.broadcast %cst_31 : f32 to vector<8x128xf32>
    %125 = arith.addf %124, %123 : vector<8x128xf32>
    %126 = arith.divf %124, %125 : vector<8x128xf32>
    %127 = vector.extract_strided_slice %109 {offsets = [0, 256], sizes = [8, 128], strides = [1, 1]} : vector<8x384xf32> to vector<8x128xf32>
    %128 = vector.extract_strided_slice %110 {offsets = [0, 256], sizes = [8, 128], strides = [1, 1]} : vector<8x384xf32> to vector<8x128xf32>
    %129 = arith.addf %128, %6 : vector<8x128xf32>
    %130 = arith.mulf %118, %129 : vector<8x128xf32>
    %131 = arith.addf %127, %130 : vector<8x128xf32>
    %132 = math.tanh %131 : vector<8x128xf32>
    %133 = arith.subf %102, %132 : vector<8x128xf32>
    %134 = arith.mulf %126, %133 : vector<8x128xf32>
    %135 = arith.addf %132, %134 : vector<8x128xf32>
    %136 = arith.index_cast %c3_i32 : i32 to index
    %c0_32 = arith.constant 0 : index
    %c0_33 = arith.constant 0 : index
    %137 = vector.load %arg4[%136, %c0_32, %c0_33] : memref<8x8x128xf32, #tpu.memory_space<vmem>>, vector<1x8x128xf32>
    %138 = vector.shape_cast %137 : vector<1x8x128xf32> to vector<8x128xf32>
    %139 = vector.shape_cast %135 : vector<8x128xf32> to vector<1x8x128xf32>
    tpu.vector_store %arg4[%136, %c0_32, %c0_33], %139 {strides = array<i32>} : memref<8x8x128xf32, #tpu.memory_space<vmem>>, vector<1x8x128xf32>,
    %c4_i32 = arith.constant 4 : i32
    %140 = arith.index_cast %c4_i32 : i32 to index
    %c0_34 = arith.constant 0 : index
    %c0_35 = arith.constant 0 : index
    %141 = vector.load %arg1[%140, %c0_34, %c0_35] : memref<8x8x384xf32, #tpu.memory_space<vmem>>, vector<1x8x384xf32>
    %142 = vector.shape_cast %141 : vector<1x8x384xf32> to vector<8x384xf32>
    %cst_36 = arith.constant dense<0.000000e+00> : vector<8x384xf32>
    %143 = tpu.matmul %135, %3, %cst_36 {dimension_numbers = #tpu.dot_dimension_numbers<[1], [0], [0], [1], [0, 0, 1, 1], [], []>} : vector<8x128xf32>, vector<128x384xf32>, vector<8x384xf32> -> vector<8x384xf32>
    %144 = vector.extract_strided_slice %142 {offsets = [0, 0], sizes = [8, 128], strides = [1, 1]} : vector<8x384xf32> to vector<8x128xf32>
    %145 = vector.extract_strided_slice %143 {offsets = [0, 0], sizes = [8, 128], strides = [1, 1]} : vector<8x384xf32> to vector<8x128xf32>
    %146 = arith.addf %144, %145 : vector<8x128xf32>
    %147 = arith.negf %146 : vector<8x128xf32>
    %148 = math.exp %147 : vector<8x128xf32>
    %cst_37 = arith.constant 1.000000e+00 : f32
    %149 = vector.broadcast %cst_37 : f32 to vector<8x128xf32>
    %150 = arith.addf %149, %148 : vector<8x128xf32>
    %151 = arith.divf %149, %150 : vector<8x128xf32>
    %152 = vector.extract_strided_slice %142 {offsets = [0, 128], sizes = [8, 128], strides = [1, 1]} : vector<8x384xf32> to vector<8x128xf32>
    %153 = vector.extract_strided_slice %143 {offsets = [0, 128], sizes = [8, 128], strides = [1, 1]} : vector<8x384xf32> to vector<8x128xf32>
    %154 = arith.addf %152, %153 : vector<8x128xf32>
    %155 = arith.negf %154 : vector<8x128xf32>
    %156 = math.exp %155 : vector<8x128xf32>
    %cst_38 = arith.constant 1.000000e+00 : f32
    %157 = vector.broadcast %cst_38 : f32 to vector<8x128xf32>
    %158 = arith.addf %157, %156 : vector<8x128xf32>
    %159 = arith.divf %157, %158 : vector<8x128xf32>
    %160 = vector.extract_strided_slice %142 {offsets = [0, 256], sizes = [8, 128], strides = [1, 1]} : vector<8x384xf32> to vector<8x128xf32>
    %161 = vector.extract_strided_slice %143 {offsets = [0, 256], sizes = [8, 128], strides = [1, 1]} : vector<8x384xf32> to vector<8x128xf32>
    %162 = arith.addf %161, %6 : vector<8x128xf32>
    %163 = arith.mulf %151, %162 : vector<8x128xf32>
    %164 = arith.addf %160, %163 : vector<8x128xf32>
    %165 = math.tanh %164 : vector<8x128xf32>
    %166 = arith.subf %135, %165 : vector<8x128xf32>
    %167 = arith.mulf %159, %166 : vector<8x128xf32>
    %168 = arith.addf %165, %167 : vector<8x128xf32>
    %169 = arith.index_cast %c4_i32 : i32 to index
    %c0_39 = arith.constant 0 : index
    %c0_40 = arith.constant 0 : index
    %170 = vector.load %arg4[%169, %c0_39, %c0_40] : memref<8x8x128xf32, #tpu.memory_space<vmem>>, vector<1x8x128xf32>
    %171 = vector.shape_cast %170 : vector<1x8x128xf32> to vector<8x128xf32>
    %172 = vector.shape_cast %168 : vector<8x128xf32> to vector<1x8x128xf32>
    tpu.vector_store %arg4[%169, %c0_39, %c0_40], %172 {strides = array<i32>} : memref<8x8x128xf32, #tpu.memory_space<vmem>>, vector<1x8x128xf32>,
    %c5_i32 = arith.constant 5 : i32
    %173 = arith.index_cast %c5_i32 : i32 to index
    %c0_41 = arith.constant 0 : index
    %c0_42 = arith.constant 0 : index
    %174 = vector.load %arg1[%173, %c0_41, %c0_42] : memref<8x8x384xf32, #tpu.memory_space<vmem>>, vector<1x8x384xf32>
    %175 = vector.shape_cast %174 : vector<1x8x384xf32> to vector<8x384xf32>
    %cst_43 = arith.constant dense<0.000000e+00> : vector<8x384xf32>
    %176 = tpu.matmul %168, %3, %cst_43 {dimension_numbers = #tpu.dot_dimension_numbers<[1], [0], [0], [1], [0, 0, 1, 1], [], []>} : vector<8x128xf32>, vector<128x384xf32>, vector<8x384xf32> -> vector<8x384xf32>
    %177 = vector.extract_strided_slice %175 {offsets = [0, 0], sizes = [8, 128], strides = [1, 1]} : vector<8x384xf32> to vector<8x128xf32>
    %178 = vector.extract_strided_slice %176 {offsets = [0, 0], sizes = [8, 128], strides = [1, 1]} : vector<8x384xf32> to vector<8x128xf32>
    %179 = arith.addf %177, %178 : vector<8x128xf32>
    %180 = arith.negf %179 : vector<8x128xf32>
    %181 = math.exp %180 : vector<8x128xf32>
    %cst_44 = arith.constant 1.000000e+00 : f32
    %182 = vector.broadcast %cst_44 : f32 to vector<8x128xf32>
    %183 = arith.addf %182, %181 : vector<8x128xf32>
    %184 = arith.divf %182, %183 : vector<8x128xf32>
    %185 = vector.extract_strided_slice %175 {offsets = [0, 128], sizes = [8, 128], strides = [1, 1]} : vector<8x384xf32> to vector<8x128xf32>
    %186 = vector.extract_strided_slice %176 {offsets = [0, 128], sizes = [8, 128], strides = [1, 1]} : vector<8x384xf32> to vector<8x128xf32>
    %187 = arith.addf %185, %186 : vector<8x128xf32>
    %188 = arith.negf %187 : vector<8x128xf32>
    %189 = math.exp %188 : vector<8x128xf32>
    %cst_45 = arith.constant 1.000000e+00 : f32
    %190 = vector.broadcast %cst_45 : f32 to vector<8x128xf32>
    %191 = arith.addf %190, %189 : vector<8x128xf32>
    %192 = arith.divf %190, %191 : vector<8x128xf32>
    %193 = vector.extract_strided_slice %175 {offsets = [0, 256], sizes = [8, 128], strides = [1, 1]} : vector<8x384xf32> to vector<8x128xf32>
    %194 = vector.extract_strided_slice %176 {offsets = [0, 256], sizes = [8, 128], strides = [1, 1]} : vector<8x384xf32> to vector<8x128xf32>
    %195 = arith.addf %194, %6 : vector<8x128xf32>
    %196 = arith.mulf %184, %195 : vector<8x128xf32>
    %197 = arith.addf %193, %196 : vector<8x128xf32>
    %198 = math.tanh %197 : vector<8x128xf32>
    %199 = arith.subf %168, %198 : vector<8x128xf32>
    %200 = arith.mulf %192, %199 : vector<8x128xf32>
    %201 = arith.addf %198, %200 : vector<8x128xf32>
    %202 = arith.index_cast %c5_i32 : i32 to index
    %c0_46 = arith.constant 0 : index
    %c0_47 = arith.constant 0 : index
    %203 = vector.load %arg4[%202, %c0_46, %c0_47] : memref<8x8x128xf32, #tpu.memory_space<vmem>>, vector<1x8x128xf32>
    %204 = vector.shape_cast %203 : vector<1x8x128xf32> to vector<8x128xf32>
    %205 = vector.shape_cast %201 : vector<8x128xf32> to vector<1x8x128xf32>
    tpu.vector_store %arg4[%202, %c0_46, %c0_47], %205 {strides = array<i32>} : memref<8x8x128xf32, #tpu.memory_space<vmem>>, vector<1x8x128xf32>,
    %c6_i32 = arith.constant 6 : i32
    %206 = arith.index_cast %c6_i32 : i32 to index
    %c0_48 = arith.constant 0 : index
    %c0_49 = arith.constant 0 : index
    %207 = vector.load %arg1[%206, %c0_48, %c0_49] : memref<8x8x384xf32, #tpu.memory_space<vmem>>, vector<1x8x384xf32>
    %208 = vector.shape_cast %207 : vector<1x8x384xf32> to vector<8x384xf32>
    %cst_50 = arith.constant dense<0.000000e+00> : vector<8x384xf32>
    %209 = tpu.matmul %201, %3, %cst_50 {dimension_numbers = #tpu.dot_dimension_numbers<[1], [0], [0], [1], [0, 0, 1, 1], [], []>} : vector<8x128xf32>, vector<128x384xf32>, vector<8x384xf32> -> vector<8x384xf32>
    %210 = vector.extract_strided_slice %208 {offsets = [0, 0], sizes = [8, 128], strides = [1, 1]} : vector<8x384xf32> to vector<8x128xf32>
    %211 = vector.extract_strided_slice %209 {offsets = [0, 0], sizes = [8, 128], strides = [1, 1]} : vector<8x384xf32> to vector<8x128xf32>
    %212 = arith.addf %210, %211 : vector<8x128xf32>
    %213 = arith.negf %212 : vector<8x128xf32>
    %214 = math.exp %213 : vector<8x128xf32>
    %cst_51 = arith.constant 1.000000e+00 : f32
    %215 = vector.broadcast %cst_51 : f32 to vector<8x128xf32>
    %216 = arith.addf %215, %214 : vector<8x128xf32>
    %217 = arith.divf %215, %216 : vector<8x128xf32>
    %218 = vector.extract_strided_slice %208 {offsets = [0, 128], sizes = [8, 128], strides = [1, 1]} : vector<8x384xf32> to vector<8x128xf32>
    %219 = vector.extract_strided_slice %209 {offsets = [0, 128], sizes = [8, 128], strides = [1, 1]} : vector<8x384xf32> to vector<8x128xf32>
    %220 = arith.addf %218, %219 : vector<8x128xf32>
    %221 = arith.negf %220 : vector<8x128xf32>
    %222 = math.exp %221 : vector<8x128xf32>
    %cst_52 = arith.constant 1.000000e+00 : f32
    %223 = vector.broadcast %cst_52 : f32 to vector<8x128xf32>
    %224 = arith.addf %223, %222 : vector<8x128xf32>
    %225 = arith.divf %223, %224 : vector<8x128xf32>
    %226 = vector.extract_strided_slice %208 {offsets = [0, 256], sizes = [8, 128], strides = [1, 1]} : vector<8x384xf32> to vector<8x128xf32>
    %227 = vector.extract_strided_slice %209 {offsets = [0, 256], sizes = [8, 128], strides = [1, 1]} : vector<8x384xf32> to vector<8x128xf32>
    %228 = arith.addf %227, %6 : vector<8x128xf32>
    %229 = arith.mulf %217, %228 : vector<8x128xf32>
    %230 = arith.addf %226, %229 : vector<8x128xf32>
    %231 = math.tanh %230 : vector<8x128xf32>
    %232 = arith.subf %201, %231 : vector<8x128xf32>
    %233 = arith.mulf %225, %232 : vector<8x128xf32>
    %234 = arith.addf %231, %233 : vector<8x128xf32>
    %235 = arith.index_cast %c6_i32 : i32 to index
    %c0_53 = arith.constant 0 : index
    %c0_54 = arith.constant 0 : index
    %236 = vector.load %arg4[%235, %c0_53, %c0_54] : memref<8x8x128xf32, #tpu.memory_space<vmem>>, vector<1x8x128xf32>
    %237 = vector.shape_cast %236 : vector<1x8x128xf32> to vector<8x128xf32>
    %238 = vector.shape_cast %234 : vector<8x128xf32> to vector<1x8x128xf32>
    tpu.vector_store %arg4[%235, %c0_53, %c0_54], %238 {strides = array<i32>} : memref<8x8x128xf32, #tpu.memory_space<vmem>>, vector<1x8x128xf32>,
    %c7_i32 = arith.constant 7 : i32
    %239 = arith.index_cast %c7_i32 : i32 to index
    %c0_55 = arith.constant 0 : index
    %c0_56 = arith.constant 0 : index
    %240 = vector.load %arg1[%239, %c0_55, %c0_56] : memref<8x8x384xf32, #tpu.memory_space<vmem>>, vector<1x8x384xf32>
    %241 = vector.shape_cast %240 : vector<1x8x384xf32> to vector<8x384xf32>
    %cst_57 = arith.constant dense<0.000000e+00> : vector<8x384xf32>
    %242 = tpu.matmul %234, %3, %cst_57 {dimension_numbers = #tpu.dot_dimension_numbers<[1], [0], [0], [1], [0, 0, 1, 1], [], []>} : vector<8x128xf32>, vector<128x384xf32>, vector<8x384xf32> -> vector<8x384xf32>
    %243 = vector.extract_strided_slice %241 {offsets = [0, 0], sizes = [8, 128], strides = [1, 1]} : vector<8x384xf32> to vector<8x128xf32>
    %244 = vector.extract_strided_slice %242 {offsets = [0, 0], sizes = [8, 128], strides = [1, 1]} : vector<8x384xf32> to vector<8x128xf32>
    %245 = arith.addf %243, %244 : vector<8x128xf32>
    %246 = arith.negf %245 : vector<8x128xf32>
    %247 = math.exp %246 : vector<8x128xf32>
    %cst_58 = arith.constant 1.000000e+00 : f32
    %248 = vector.broadcast %cst_58 : f32 to vector<8x128xf32>
    %249 = arith.addf %248, %247 : vector<8x128xf32>
    %250 = arith.divf %248, %249 : vector<8x128xf32>
    %251 = vector.extract_strided_slice %241 {offsets = [0, 128], sizes = [8, 128], strides = [1, 1]} : vector<8x384xf32> to vector<8x128xf32>
    %252 = vector.extract_strided_slice %242 {offsets = [0, 128], sizes = [8, 128], strides = [1, 1]} : vector<8x384xf32> to vector<8x128xf32>
    %253 = arith.addf %251, %252 : vector<8x128xf32>
    %254 = arith.negf %253 : vector<8x128xf32>
    %255 = math.exp %254 : vector<8x128xf32>
    %cst_59 = arith.constant 1.000000e+00 : f32
    %256 = vector.broadcast %cst_59 : f32 to vector<8x128xf32>
    %257 = arith.addf %256, %255 : vector<8x128xf32>
    %258 = arith.divf %256, %257 : vector<8x128xf32>
    %259 = vector.extract_strided_slice %241 {offsets = [0, 256], sizes = [8, 128], strides = [1, 1]} : vector<8x384xf32> to vector<8x128xf32>
    %260 = vector.extract_strided_slice %242 {offsets = [0, 256], sizes = [8, 128], strides = [1, 1]} : vector<8x384xf32> to vector<8x128xf32>
    %261 = arith.addf %260, %6 : vector<8x128xf32>
    %262 = arith.mulf %250, %261 : vector<8x128xf32>
    %263 = arith.addf %259, %262 : vector<8x128xf32>
    %264 = math.tanh %263 : vector<8x128xf32>
    %265 = arith.subf %234, %264 : vector<8x128xf32>
    %266 = arith.mulf %258, %265 : vector<8x128xf32>
    %267 = arith.addf %264, %266 : vector<8x128xf32>
    %268 = arith.index_cast %c7_i32 : i32 to index
    %c0_60 = arith.constant 0 : index
    %c0_61 = arith.constant 0 : index
    %269 = vector.load %arg4[%268, %c0_60, %c0_61] : memref<8x8x128xf32, #tpu.memory_space<vmem>>, vector<1x8x128xf32>
    %270 = vector.shape_cast %269 : vector<1x8x128xf32> to vector<8x128xf32>
    %271 = vector.shape_cast %267 : vector<8x128xf32> to vector<1x8x128xf32>
    tpu.vector_store %arg4[%268, %c0_60, %c0_61], %271 {strides = array<i32>} : memref<8x8x128xf32, #tpu.memory_space<vmem>>, vector<1x8x128xf32>,
    %c8_i32 = arith.constant 8 : i32
    %c0_62 = arith.constant 0 : index
    %c0_63 = arith.constant 0 : index
    %272 = vector.load %arg5[%c0_62, %c0_63] : memref<8x128xf32, #tpu.memory_space<vmem>>, vector<8x128xf32>
    tpu.vector_store %arg5[%c0_62, %c0_63], %267 {strides = array<i32>} : memref<8x128xf32, #tpu.memory_space<vmem>>, vector<8x128xf32>,
    return
  }
  func.func @transform_0(%arg0: i32) -> (i32, i32, i32) {
    %c0_i32 = arith.constant 0 : i32
    %c0_i32_0 = arith.constant 0 : i32
    %c0_i32_1 = arith.constant 0 : i32
    return %arg0, %c0_i32, %c0_i32_0 : i32, i32, i32
  }
  func.func @transform_1(%arg0: i32) -> (i32, i32) {
    %c0_i32 = arith.constant 0 : i32
    %c0_i32_0 = arith.constant 0 : i32
    %c0_i32_1 = arith.constant 0 : i32
    return %c0_i32, %c0_i32_0 : i32, i32
  }
  func.func @transform_2(%arg0: i32) -> (i32, i32) {
    %c0_i32 = arith.constant 0 : i32
    %c0_i32_0 = arith.constant 0 : i32
    %c0_i32_1 = arith.constant 0 : i32
    return %c0_i32, %c0_i32_0 : i32, i32
  }
  func.func @transform_3(%arg0: i32) -> (i32, i32, i32) {
    %c0_i32 = arith.constant 0 : i32
    %c0_i32_0 = arith.constant 0 : i32
    %c0_i32_1 = arith.constant 0 : i32
    return %arg0, %c0_i32, %c0_i32_0 : i32, i32, i32
  }
}

module attributes {stable_mosaic.version = 11 : i64} {
  func.func @_matmul_bias_kernel(%arg0: i32, %arg1: memref<64x128xf32, #tpu.memory_space<vmem>>, %arg2: memref<128x128xf32, #tpu.memory_space<vmem>>, %arg3: memref<1x128xf32, #tpu.memory_space<vmem>>, %arg4: memref<64x128xf32, #tpu.memory_space<vmem>>) attributes {dimension_semantics = [#tpu.dimension_semantics<parallel>], iteration_bounds = array<i64: 1>, scalar_prefetch = 0 : i64, scratch_operands = 0 : i64, tpu.core_type = #tpu.core_type<tc>, window_params = [{transform_indices = @transform_0, window_bounds = array<i64: 64, 128>}, {pipeline_mode = #tpu.pipeline_mode<synchronous>, transform_indices = @transform_1, window_bounds = array<i64: 128, 128>}, {pipeline_mode = #tpu.pipeline_mode<synchronous>, transform_indices = @transform_2, window_bounds = array<i64: 1, 128>}, {transform_indices = @transform_3, window_bounds = array<i64: 64, 128>}]} {
    %c0 = arith.constant 0 : index
    %c0_0 = arith.constant 0 : index
    %0 = vector.load %arg1[%c0, %c0_0] : memref<64x128xf32, #tpu.memory_space<vmem>>, vector<64x128xf32>
    %c0_1 = arith.constant 0 : index
    %c0_2 = arith.constant 0 : index
    %1 = vector.load %arg2[%c0_1, %c0_2] : memref<128x128xf32, #tpu.memory_space<vmem>>, vector<128x128xf32>
    %cst = arith.constant dense<0.000000e+00> : vector<64x128xf32>
    %2 = tpu.matmul %0, %1, %cst {dimension_numbers = #tpu.dot_dimension_numbers<[1], [0], [0], [1], [0, 0, 1, 1], [], []>} : vector<64x128xf32>, vector<128x128xf32>, vector<64x128xf32> -> vector<64x128xf32>
    %c0_3 = arith.constant 0 : index
    %c0_4 = arith.constant 0 : index
    %3 = vector.load %arg3[%c0_3, %c0_4] : memref<1x128xf32, #tpu.memory_space<vmem>>, vector<1x128xf32>
    %4 = vector.broadcast %3 : vector<1x128xf32> to vector<64x128xf32>
    %5 = arith.addf %2, %4 : vector<64x128xf32>
    %c0_5 = arith.constant 0 : index
    %c0_6 = arith.constant 0 : index
    %6 = vector.load %arg4[%c0_5, %c0_6] : memref<64x128xf32, #tpu.memory_space<vmem>>, vector<64x128xf32>
    tpu.vector_store %arg4[%c0_5, %c0_6], %5 {strides = array<i32>} : memref<64x128xf32, #tpu.memory_space<vmem>>, vector<64x128xf32>,
    return
  }
  func.func @transform_0(%arg0: i32) -> (i32, i32) {
    %c0_i32 = arith.constant 0 : i32
    %c0_i32_0 = arith.constant 0 : i32
    return %arg0, %c0_i32 : i32, i32
  }
  func.func @transform_1(%arg0: i32) -> (i32, i32) {
    %c0_i32 = arith.constant 0 : i32
    %c0_i32_0 = arith.constant 0 : i32
    %c0_i32_1 = arith.constant 0 : i32
    return %c0_i32, %c0_i32_0 : i32, i32
  }
  func.func @transform_2(%arg0: i32) -> (i32, i32) {
    %c0_i32 = arith.constant 0 : i32
    %c0_i32_0 = arith.constant 0 : i32
    %c0_i32_1 = arith.constant 0 : i32
    return %c0_i32, %c0_i32_0 : i32, i32
  }
  func.func @transform_3(%arg0: i32) -> (i32, i32) {
    %c0_i32 = arith.constant 0 : i32
    %c0_i32_0 = arith.constant 0 : i32
    return %arg0, %c0_i32 : i32, i32
  }
}

</mosaic_0001>

<bundles_post_ra>
// kernel: encoder_forward.3
= control target key start
LH: loop header
LB: loop body
LE: loop exit
PB: predicated region body
PF: predicated region fallthrough
CT: control target
= control target key end

     0   :  { %v466_v3 = vmov 0.0   ;;  %s758_s1 = inlined_call_operand.vmem [shape: f32[128,384], index: 1, kind: input, shape index: {}]   ;;  %s759_s0 = inlined_call_operand.vmem [shape: f32[64,128], index: 0, kind: input, shape index: {}]   ;;  %s760_s2 = inlined_call_operand.vmem [shape: f32[1,384], index: 2, kind: input, shape index: {}]   ;;  %s761_s3 = inlined_call_operand.vmem [shape: f32[64,384], index: 3, kind: output, shape index: {}]  }
   0x1   :  { %v23_v0 = vld [vmem:[%s758_s1 + $0x8] sm:$0xff]  ;;  %v26_v1 = vld [vmem:[%s758_s1 + $0x20] sm:$0xff]  ;;  %151 = vmatprep.mubr.f32.mxu0 %v466_v3  ;;  %v25_v5 = vld [vmem:[%s758_s1 + $0x18] sm:$0xff] }
   0x2   :  { %v22_v2 = vld [vmem:[%s758_s1] sm:$0xff]  ;;  %v401_v4 = vpack.c.bf16 %v26_v1, %v23_v0  ;;  %v29_v6 = vld [vmem:[%s758_s1 + $0x38] sm:$0xff]  ;;  %v32_v7 = vld [vmem:[%s758_s1 + $0x50] sm:$0xff] }
   0x3   :  { %v403_v8 = vpack.c.bf16 %v25_v5, %v22_v2  ;;  %v405_v9 = vpack.c.bf16 %v32_v7, %v29_v6  ;;  %v28_v10 = vld [vmem:[%s758_s1 + $0x30] sm:$0xff]  ;;  %v31_v11 = vld [vmem:[%s758_s1 + $0x48] sm:$0xff]  ;;  %v38_v13 = vld [vmem:[%s758_s1 + $0x80] sm:$0xff] }
   0x4   :  { %v35_v12 = vld [vmem:[%s758_s1 + $0x68] sm:$0xff]  ;;  %402 = vmatprep.subr.bf16.mxu0 %v401_v4  ;;  %v407_v14 = vpack.c.bf16 %v31_v11, %v28_v10  ;;  %v34_v15 = vld [vmem:[%s758_s1 + $0x60] sm:$0xff]  ;;  %v37_v17 = vld [vmem:[%s758_s1 + $0x78] sm:$0xff] }
   0x5   :  { %404 = vmatpush1.bf16.msra.mxu0 %v403_v8  ;;  %v409_v16 = vpack.c.bf16 %v38_v13, %v35_v12  ;;  %v24_v18 = vld [vmem:[%s758_s1 + $0x10] sm:$0xff]  ;;  %v27_v19 = vld [vmem:[%s758_s1 + $0x28] sm:$0xff]  ;;  %v41_v20 = vld [vmem:[%s758_s1 + $0x98] sm:$0xff]  ;;  %v411_v25 = vpack.c.bf16 %v37_v17, %v34_v15 }
   0x6   :  { %406 = vmatprep.subr.bf16.mxu0 %v405_v9  ;;  %v44_v21 = vld [vmem:[%s758_s1 + $0xb0] sm:$0xff]  ;;  %v433_v22 = vpack.c.bf16 %v27_v19, %v24_v18  ;;  %v30_v23 = vld [vmem:[%s758_s1 + $0x40] sm:$0xff]  ;;  %v33_v24 = vld [vmem:[%s758_s1 + $0x58] sm:$0xff]  ;;  %v72_v18 = vlaneseq }
   0x7   :  { %v40_v26 = vld [vmem:[%s758_s1 + $0x90] sm:$0xff]  ;;  %v437_v27 = vpack.c.bf16 %v33_v24, %v30_v23  ;;  %v413_v28 = vpack.c.bf16 %v44_v21, %v41_v20  ;;  %v43_v29 = vld [vmem:[%s758_s1 + $0xa8] sm:$0xff]  ;;  %v50_v33 = vld [vmem:[%s758_s1 + $0xe0] sm:$0xff] }
   0x8   :  { %434 = vmatprep.subr.bf16.mxu1 %v433_v22  ;;  %v36_v30 = vld [vmem:[%s758_s1 + $0x70] sm:$0xff]  ;;  %v39_v31 = vld [vmem:[%s758_s1 + $0x88] sm:$0xff]  ;;  %v42_v35 = vld [vmem:[%s758_s1 + $0xa0] sm:$0xff]  ;;  %v415_v37 = vpack.c.bf16 %v43_v29, %v40_v26  ;;  %v73_v19 = vshrl.u32 %v72_v18, 7 }
   0x9   :  { %408 = vmatpush1.bf16.msra.mxu0 %v407_v14  ;;  %436 = vmatpush3.bf16.msra.mxu1 %v433_v22  ;;  %v47_v32 = vld [vmem:[%s758_s1 + $0xc8] sm:$0xff]  ;;  %v441_v34 = vpack.c.bf16 %v39_v31, %v36_v30  ;;  %v45_v36 = vld [vmem:[%s758_s1 + $0xb8] sm:$0xff]  ;;  %v46_v39 = vld [vmem:[%s758_s1 + $0xc0] sm:$0xff] }
   0xa   :  { %410 = vmatprep.subr.bf16.mxu0 %v409_v16  ;;  %438 = vmatprep.subr.bf16.mxu1 %v437_v27  ;;  %v417_v38 = vpack.c.bf16 %v50_v33, %v47_v32  ;;  %v49_v40 = vld [vmem:[%s758_s1 + $0xd8] sm:$0xff]  ;;  %v56_v42 = vld [vmem:[%s758_s1 + $0x110] sm:$0xff]  ;;  %v445_v43 = vpack.c.bf16 %v45_v36, %v42_v35  ;;  %v14_v44 = vld [vmem:[%s759_s0] sm:$0xff]  ;;  %v74_v20 = vsub.s32 0, %v73_v19  ;;  %v78_v22 = vsub.s32 1, %v73_v19 }
   0xb   :  { %v53_v41 = vld [vmem:[%s758_s1 + $0xf8] sm:$0xff]  ;;  %v48_v45 = vld [vmem:[%s758_s1 + $0xd0] sm:$0xff]  ;;  %v51_v46 = vld [vmem:[%s758_s1 + $0xe8] sm:$0xff]  ;;  %389 = vmatprep.mubr.f32.mxu1 %v14_v44  ;;  %v419_v47 = vpack.c.bf16 %v49_v40, %v46_v39 }
   0xc   :  { %v421_v48 = vpack.c.bf16 %v56_v42, %v53_v41  ;;  %v52_v49 = vld [vmem:[%s758_s1 + $0xf0] sm:$0xff]  ;;  %v55_v50 = vld [vmem:[%s758_s1 + $0x108] sm:$0xff]  ;;  %v62_v52 = vld [vmem:[%s758_s1 + $0x140] sm:$0xff]  ;;  %v449_v53 = vpack.c.bf16 %v51_v46, %v48_v45 }
   0xd   :  { %412 = vmatpush1.bf16.msra.mxu0 %v411_v25  ;;  %440 = vmatpush3.bf16.msra.mxu1 %v437_v27  ;;  %v59_v51 = vld [vmem:[%s758_s1 + $0x128] sm:$0xff]  ;;  %v54_v54 = vld [vmem:[%s758_s1 + $0x100] sm:$0xff]  ;;  %v57_v55 = vld [vmem:[%s758_s1 + $0x118] sm:$0xff]  ;;  %v423_v56 = vpack.c.bf16 %v55_v50, %v52_v49  ;;  %v82_v25 = vsub.s32 2, %v73_v19 }
   0xe   :  { %414 = vmatprep.subr.bf16.mxu0 %v413_v28  ;;  %442 = vmatprep.subr.bf16.mxu1 %v441_v34  ;;  %v425_v57 = vpack.c.bf16 %v62_v52, %v59_v51  ;;  %v58_v58 = vld [vmem:[%s758_s1 + $0x120] sm:$0xff]  ;;  %v61_v59 = vld [vmem:[%s758_s1 + $0x138] sm:$0xff]  ;;  %v68_v61 = vld [vmem:[%s758_s1 + $0x170] sm:$0xff]  ;;  %v453_v62 = vpack.c.bf16 %v57_v55, %v54_v54 }
   0xf   :  { %v65_v60 = vld [vmem:[%s758_s1 + $0x158] sm:$0xff]  ;;  %v60_v63 = vld [vmem:[%s758_s1 + $0x130] sm:$0xff]  ;;  %v63_v0 = vld [vmem:[%s758_s1 + $0x148] sm:$0xff]  ;;  %v427_v1 = vpack.c.bf16 %v61_v59, %v58_v58 }
  0x10   :  { %v429_v2 = vpack.c.bf16 %v68_v61, %v65_v60  ;;  %v64_v4 = vld [vmem:[%s758_s1 + $0x150] sm:$0xff]  ;;  %v67_v5 = vld [vmem:[%s758_s1 + $0x168] sm:$0xff]  ;;  %v457_v6 = vpack.c.bf16 %v63_v0, %v60_v63  ;;  %v66_v7 = vld [vmem:[%s758_s1 + $0x160] sm:$0xff] }
  0x11   :  { %416 = vmatpush1.bf16.msra.mxu0 %v415_v37  ;;  %444 = vmatpush3.bf16.msra.mxu1 %v441_v34  ;;  %v69_v8 = vld [vmem:[%s758_s1 + $0x178] sm:$0xff]  ;;  %v431_v9 = vpack.c.bf16 %v67_v5, %v64_v4  ;;  %v15_v11 = vld [vmem:[%s759_s0 + $0x8] sm:$0xff]  ;;  %v16_v12 = vld [vmem:[%s759_s0 + $0x10] sm:$0xff] }
  0x12   :  { %418 = vmatprep.subr.bf16.mxu0 %v417_v38  ;;  %446 = vmatprep.subr.bf16.mxu1 %v445_v43  ;;  %v461_v10 = vpack.c.bf16 %v69_v8, %v66_v7  ;;  %v17_v13 = vld [vmem:[%s759_s0 + $0x18] sm:$0xff]  ;;  %v18_v14 = vld [vmem:[%s759_s0 + $0x20] sm:$0xff]  ;;  %v19_v15 = vld [vmem:[%s759_s0 + $0x28] sm:$0xff] }
  0x13   :  { %v20_v16 = vld [vmem:[%s759_s0 + $0x30] sm:$0xff]  ;;  %v21_v17 = vld [vmem:[%s759_s0 + $0x38] sm:$0xff]  ;;  %v70_v21 = vld [vmem:[%s760_s2] sm:$0x7] }
  0x14   :  { %v666_v23 = vrot.slane %v70_v21, %v74_v20  ;;  %v668_v24 = vrot.slane %v70_v21, %v78_v22  ;;  %v83_v29 = vrot.slane %v70_v21, %v82_v25 }
  0x15   :  { %420 = vmatpush1.bf16.msra.mxu0 %v419_v47  ;;  %448 = vmatpush3.bf16.msra.mxu1 %v445_v43 }
  0x16   :  { %422 = vmatprep.subr.bf16.mxu0 %v421_v48  ;;  %450 = vmatprep.subr.bf16.mxu1 %v449_v53 }
  0x19   :  { %424 = vmatpush1.bf16.msra.mxu0 %v423_v56  ;;  %452 = vmatpush3.bf16.msra.mxu1 %v449_v53 }
  0x1a   :  { %426 = vmatprep.subr.bf16.mxu0 %v425_v57  ;;  %454 = vmatprep.subr.bf16.mxu1 %v453_v62 }
  0x1d   :  { %428 = vmatpush1.bf16.msra.mxu0 %v427_v1  ;;  %456 = vmatpush3.bf16.msra.mxu1 %v453_v62 }
  0x1e   :  { %430 = vmatprep.subr.bf16.mxu0 %v429_v2  ;;  %458 = vmatprep.subr.bf16.mxu1 %v457_v6 }
  0x21   :  { %432 = vmatpush1.bf16.msra.mxu0 %v431_v9  ;;  %460 = vmatpush3.bf16.msra.mxu1 %v457_v6 }
  0x22   :  { %462 = vmatprep.subr.bf16.mxu1 %v461_v10 }
  0x24   :  { %152 = vmatmul.mubr.f32.vlgmr.msra.gmra.mrb[0].mxu0 %v14_v44 }
  0x25   :  { %157 = vmatprep.mubr.f32.mxu0 %v466_v3  ;;  %464 = vmatpush3.bf16.msra.mxu1 %v461_v10 }
  0x28   :  { %158 = vmatmul.mubr.f32.gmra.mrb[2].mxu0 %v15_v11  ;;  %390 = vmatmul.mubr.f32.vlgmr.msra.gmra.mrb[0].mxu1 %v15_v11 }
  0x29   :  { %163 = vmatprep.mubr.f32.mxu0 %v466_v3  ;;  %392 = vmatprep.mubr.f32.mxu1 %v16_v12 }
  0x2c   :  { %164 = vmatmul.mubr.f32.gmra.mrb[4].mxu0 %v16_v12  ;;  %393 = vmatmul.mubr.f32.gmra.mrb[2].mxu1 %v17_v13 }
  0x2d   :  { %169 = vmatprep.mubr.f32.mxu0 %v466_v3  ;;  %395 = vmatprep.mubr.f32.mxu1 %v18_v14 }
  0x30   :  { %170 = vmatmul.mubr.f32.gmra.mrb[6].mxu0 %v17_v13  ;;  %396 = vmatmul.mubr.f32.gmra.mrb[4].mxu1 %v19_v15 }
  0x31   :  { %175 = vmatprep.mubr.f32.mxu0 %v466_v3  ;;  %398 = vmatprep.mubr.f32.mxu1 %v20_v16 }
  0x34   :  { %176 = vmatmul.mubr.f32.gmra.mrb[8].mxu0 %v18_v14  ;;  %399 = vmatmul.mubr.f32.gmra.mrb[6].mxu1 %v21_v17 }
  0x35   :  { %181 = vmatprep.mubr.f32.mxu0 %v466_v3 }
  0x38   :  { %182 = vmatmul.mubr.f32.gmra.mrb[10].mxu0 %v19_v15 }
  0x39   :  { %187 = vmatprep.mubr.f32.mxu0 %v466_v3 }
  0x3c   :  { %188 = vmatmul.mubr.f32.gmra.mrb[12].mxu0 %v20_v16 }
  0x3d   :  { %193 = vmatprep.mubr.f32.mxu0 %v466_v3 }
  0x40   :  { %194 = vmatmul.mubr.f32.gmra.mrb[14].mxu0 %v21_v17 }
  0xf7   :  { %v153_v26 = vpop.f32.mrb[0].mxu0 }
  0xf8   :  { %v154_v27 = vadd.f32 %v153_v26, %v666_v23  ;;  %v155_v28 = vpop.f32.mrb[1].mxu0 }
  0xf9   :  { %v156_v3 = vadd.f32 %v155_v28, %v668_v24 }
  0xfa   :  { %305 = vst [vmem:[%s761_s3] sm:$0xff] %v154_v27 }
  0xfb   :  { %306 = vst [vmem:[%s761_s3 + $0x8] sm:$0xff] %v156_v3  ;;  %v159_v30 = vpop.f32.mrb[2].mxu0  ;;  %v391_v33 = vpop.f32.mrb[0].mxu1 }
  0xfc   :  { %v160_v31 = vadd.f32 %v159_v30, %v666_v23  ;;  %v161_v32 = vpop.f32.mrb[3].mxu0  ;;  %v272_v35 = vadd.f32 %v391_v33, %v83_v29  ;;  %v266_v36 = vpop.f32.mrb[1].mxu1 }
  0xfd   :  { %v162_v34 = vadd.f32 %v161_v32, %v668_v24  ;;  %v267_v37 = vadd.f32 %v266_v36, %v83_v29 }
  0xfe   :  { %308 = vst [vmem:[%s761_s3 + $0x18] sm:$0xff] %v160_v31  ;;  %310 = vst [vmem:[%s761_s3 + $0x28] sm:$0xff] %v272_v35 }
  0xff   :  { %309 = vst [vmem:[%s761_s3 + $0x20] sm:$0xff] %v162_v34  ;;  %v165_v38 = vpop.f32.mrb[4].mxu0  ;;  %307 = vst [vmem:[%s761_s3 + $0x10] sm:$0xff] %v267_v37  ;;  %v394_v41 = vpop.f32.mrb[2].mxu1 }
 0x100   :  { %v166_v39 = vadd.f32 %v165_v38, %v666_v23  ;;  %v167_v40 = vpop.f32.mrb[5].mxu0  ;;  %v282_v43 = vadd.f32 %v394_v41, %v83_v29  ;;  %v276_v44 = vpop.f32.mrb[3].mxu1 }
 0x101   :  { %v168_v42 = vadd.f32 %v167_v40, %v668_v24  ;;  %v277_v45 = vadd.f32 %v276_v44, %v83_v29 }
 0x102   :  { %311 = vst [vmem:[%s761_s3 + $0x30] sm:$0xff] %v166_v39  ;;  %316 = vst [vmem:[%s761_s3 + $0x58] sm:$0xff] %v282_v43 }
 0x103   :  { %312 = vst [vmem:[%s761_s3 + $0x38] sm:$0xff] %v168_v42  ;;  %v171_v46 = vpop.f32.mrb[6].mxu0  ;;  %313 = vst [vmem:[%s761_s3 + $0x40] sm:$0xff] %v277_v45  ;;  %v397_v49 = vpop.f32.mrb[4].mxu1 }
 0x104   :  { %v172_v47 = vadd.f32 %v171_v46, %v666_v23  ;;  %v173_v48 = vpop.f32.mrb[7].mxu0  ;;  %v292_v51 = vadd.f32 %v397_v49, %v83_v29  ;;  %v286_v52 = vpop.f32.mrb[5].mxu1 }
 0x105   :  { %v174_v50 = vadd.f32 %v173_v48, %v668_v24  ;;  %v287_v53 = vadd.f32 %v286_v52, %v83_v29 }
 0x106   :  { %314 = vst [vmem:[%s761_s3 + $0x48] sm:$0xff] %v172_v47  ;;  %322 = vst [vmem:[%s761_s3 + $0x88] sm:$0xff] %v292_v51 }
 0x107   :  { %315 = vst [vmem:[%s761_s3 + $0x50] sm:$0xff] %v174_v50  ;;  %v177_v54 = vpop.f32.mrb[8].mxu0  ;;  %319 = vst [vmem:[%s761_s3 + $0x70] sm:$0xff] %v287_v53  ;;  %v400_v57 = vpop.f32.mrb[6].mxu1 }
 0x108   :  { %v178_v55 = vadd.f32 %v177_v54, %v666_v23  ;;  %v179_v56 = vpop.f32.mrb[9].mxu0  ;;  %v302_v59 = vadd.f32 %v400_v57, %v83_v29  ;;  %v296_v60 = vpop.f32.mrb[7].mxu1 }
 0x109   :  { %v180_v58 = vadd.f32 %v179_v56, %v668_v24  ;;  %v297_v61 = vadd.f32 %v296_v60, %v83_v29 }
 0x10a   :  { %317 = vst [vmem:[%s761_s3 + $0x60] sm:$0xff] %v178_v55  ;;  %328 = vst [vmem:[%s761_s3 + $0xb8] sm:$0xff] %v302_v59 }
 0x10b   :  { %318 = vst [vmem:[%s761_s3 + $0x68] sm:$0xff] %v180_v58  ;;  %v183_v62 = vpop.f32.mrb[10].mxu0  ;;  %325 = vst [vmem:[%s761_s3 + $0xa0] sm:$0xff] %v297_v61 }
 0x10c   :  { %v184_v63 = vadd.f32 %v183_v62, %v666_v23  ;;  %v185_v0 = vpop.f32.mrb[11].mxu0 }
 0x10d   :  { %v186_v1 = vadd.f32 %v185_v0, %v668_v24 }
 0x10e   :  { %320 = vst [vmem:[%s761_s3 + $0x78] sm:$0xff] %v184_v63 }
 0x10f   :  { %321 = vst [vmem:[%s761_s3 + $0x80] sm:$0xff] %v186_v1  ;;  %v189_v2 = vpop.f32.mrb[12].mxu0 }
 0x110   :  { %v190_v4 = vadd.f32 %v189_v2, %v666_v23  ;;  %v191_v5 = vpop.f32.mrb[13].mxu0 }
 0x111   :  { %v192_v6 = vadd.f32 %v191_v5, %v668_v24 }
 0x112   :  { %323 = vst [vmem:[%s761_s3 + $0x90] sm:$0xff] %v190_v4 }
 0x113   :  { %324 = vst [vmem:[%s761_s3 + $0x98] sm:$0xff] %v192_v6  ;;  %v195_v7 = vpop.f32.mrb[14].mxu0 }
 0x114   :  { %v196_v8 = vadd.f32 %v195_v7, %v666_v23  ;;  %v197_v9 = vpop.f32.mrb[15].mxu0 }
 0x115   :  { %v198_v10 = vadd.f32 %v197_v9, %v668_v24 }
 0x116   :  { %326 = vst [vmem:[%s761_s3 + $0xa8] sm:$0xff] %v196_v8 }
 0x117   :  { %327 = vst [vmem:[%s761_s3 + $0xb0] sm:$0xff] %v198_v10 }

// kernel: encoder_forward.5
= control target key start
LH: loop header
LB: loop body
LE: loop exit
PB: predicated region body
PF: predicated region fallthrough
CT: control target
= control target key end

     0   :  { %s398_s1 = inlined_call_operand.vmem [shape: f32[128,128], index: 1, kind: input, shape index: {}]   ;;  %s399_s0 = inlined_call_operand.vmem [shape: f32[64,128], index: 0, kind: input, shape index: {}]   ;;  %s400_s2 = inlined_call_operand.vmem [shape: f32[1,128], index: 2, kind: input, shape index: {}]   ;;  %s401_s3 = inlined_call_operand.vmem [shape: f32[64,128], index: 3, kind: output, shape index: {}]  }
   0x1   :  { %v22_v0 = vld [vmem:[%s398_s1] sm:$0xff]  ;;  %v23_v1 = vld [vmem:[%s398_s1 + $0x8] sm:$0xff]  ;;  %v24_v2 = vld [vmem:[%s398_s1 + $0x10] sm:$0xff] }
   0x2   :  { %v231_v3 = vpack.c.bf16 %v23_v1, %v22_v0  ;;  %v25_v4 = vld [vmem:[%s398_s1 + $0x18] sm:$0xff]  ;;  %v26_v6 = vld [vmem:[%s398_s1 + $0x20] sm:$0xff]  ;;  %v27_v7 = vld [vmem:[%s398_s1 + $0x28] sm:$0xff] }
   0x3   :  { %v235_v5 = vpack.c.bf16 %v25_v4, %v24_v2  ;;  %v239_v8 = vpack.c.bf16 %v27_v7, %v26_v6  ;;  %v14_v9 = vld [vmem:[%s399_s0] sm:$0xff]  ;;  %v28_v11 = vld [vmem:[%s398_s1 + $0x30] sm:$0xff]  ;;  %v29_v12 = vld [vmem:[%s398_s1 + $0x38] sm:$0xff] }
   0x4   :  { %232 = vmatprep.subr.bf16.mxu0 %v231_v3  ;;  %263 = vmatprep.subr.bf16.mxu1 %v231_v3  ;;  %v18_v10 = vld [vmem:[%s399_s0 + $0x20] sm:$0xff]  ;;  %v243_v13 = vpack.c.bf16 %v29_v12, %v28_v11  ;;  %v31_v15 = vld [vmem:[%s398_s1 + $0x48] sm:$0xff]  ;;  %v32_v17 = vld [vmem:[%s398_s1 + $0x50] sm:$0xff] }
   0x5   :  { %234 = vmatpush3.bf16.msra.mxu0 %v231_v3  ;;  %271 = vmatpush3.bf16.msra.mxu1 %v231_v3  ;;  %v30_v14 = vld [vmem:[%s398_s1 + $0x40] sm:$0xff]  ;;  %v33_v18 = vld [vmem:[%s398_s1 + $0x58] sm:$0xff]  ;;  %v35_v21 = vld [vmem:[%s398_s1 + $0x68] sm:$0xff] }
   0x6   :  { %236 = vmatprep.subr.bf16.mxu0 %v235_v5  ;;  %264 = vmatprep.subr.bf16.mxu1 %v235_v5  ;;  %v247_v16 = vpack.c.bf16 %v31_v15, %v30_v14  ;;  %v251_v19 = vpack.c.bf16 %v33_v18, %v32_v17  ;;  %v34_v20 = vld [vmem:[%s398_s1 + $0x60] sm:$0xff]  ;;  %v36_v23 = vld [vmem:[%s398_s1 + $0x70] sm:$0xff]  ;;  %v37_v24 = vld [vmem:[%s398_s1 + $0x78] sm:$0xff] }
   0x7   :  { %219 = vmatprep.mubr.f32.mxu0 %v14_v9  ;;  %225 = vmatprep.mubr.f32.mxu1 %v18_v10  ;;  %v255_v22 = vpack.c.bf16 %v35_v21, %v34_v20  ;;  %v259_v25 = vpack.c.bf16 %v37_v24, %v36_v23  ;;  %v15_v26 = vld [vmem:[%s399_s0 + $0x8] sm:$0xff]  ;;  %v16_v28 = vld [vmem:[%s399_s0 + $0x10] sm:$0xff]  ;;  %v17_v30 = vld [vmem:[%s399_s0 + $0x18] sm:$0xff] }
   0x8   :  { %v19_v27 = vld [vmem:[%s399_s0 + $0x28] sm:$0xff]  ;;  %v20_v29 = vld [vmem:[%s399_s0 + $0x30] sm:$0xff]  ;;  %v21_v31 = vld [vmem:[%s399_s0 + $0x38] sm:$0xff] }
   0x9   :  { %238 = vmatpush3.bf16.msra.mxu0 %v235_v5  ;;  %272 = vmatpush3.bf16.msra.mxu1 %v235_v5  ;;  %v162_v32 = vld [vmem:[%s400_s2] ss:$0 sm:$0xff] }
   0xa   :  { %240 = vmatprep.subr.bf16.mxu0 %v239_v8  ;;  %265 = vmatprep.subr.bf16.mxu1 %v239_v8 }
   0xd   :  { %242 = vmatpush3.bf16.msra.mxu0 %v239_v8  ;;  %273 = vmatpush3.bf16.msra.mxu1 %v239_v8 }
   0xe   :  { %244 = vmatprep.subr.bf16.mxu0 %v243_v13  ;;  %266 = vmatprep.subr.bf16.mxu1 %v243_v13 }
  0x11   :  { %246 = vmatpush3.bf16.msra.mxu0 %v243_v13  ;;  %274 = vmatpush3.bf16.msra.mxu1 %v243_v13 }
  0x12   :  { %248 = vmatprep.subr.bf16.mxu0 %v247_v16  ;;  %267 = vmatprep.subr.bf16.mxu1 %v247_v16 }
  0x15   :  { %250 = vmatpush3.bf16.msra.mxu0 %v247_v16  ;;  %275 = vmatpush3.bf16.msra.mxu1 %v247_v16 }
  0x16   :  { %252 = vmatprep.subr.bf16.mxu0 %v251_v19  ;;  %268 = vmatprep.subr.bf16.mxu1 %v251_v19 }
  0x19   :  { %254 = vmatpush3.bf16.msra.mxu0 %v251_v19  ;;  %276 = vmatpush3.bf16.msra.mxu1 %v251_v19 }
  0x1a   :  { %256 = vmatprep.subr.bf16.mxu0 %v255_v22  ;;  %269 = vmatprep.subr.bf16.mxu1 %v255_v22 }
  0x1d   :  { %258 = vmatpush3.bf16.msra.mxu0 %v255_v22  ;;  %277 = vmatpush3.bf16.msra.mxu1 %v255_v22 }
  0x1e   :  { %260 = vmatprep.subr.bf16.mxu0 %v259_v25  ;;  %270 = vmatprep.subr.bf16.mxu1 %v259_v25 }
  0x21   :  { %262 = vmatpush3.bf16.msra.mxu0 %v259_v25  ;;  %278 = vmatpush3.bf16.msra.mxu1 %v259_v25 }
  0x24   :  { %220 = vmatmul.mubr.f32.vlgmr.msra.gmra.mrb[0].mxu0 %v15_v26  ;;  %226 = vmatmul.mubr.f32.vlgmr.msra.gmra.mrb[0].mxu1 %v19_v27 }
  0x25   :  { %222 = vmatprep.mubr.f32.mxu0 %v16_v28  ;;  %228 = vmatprep.mubr.f32.mxu1 %v20_v29 }
  0x28   :  { %223 = vmatmul.mubr.f32.gmra.mrb[2].mxu0 %v17_v30  ;;  %229 = vmatmul.mubr.f32.gmra.mrb[2].mxu1 %v21_v31 }
  0xf7   :  { %v221_v33 = vpop.f32.mrb[0].mxu0  ;;  %v227_v34 = vpop.f32.mrb[0].mxu1 }
  0xf8   :  { %v117_v35 = vadd.f32 %v221_v33, %v162_v32  ;;  %v137_v36 = vadd.f32 %v227_v34, %v162_v32  ;;  %v111_v37 = vpop.f32.mrb[1].mxu0  ;;  %v131_v38 = vpop.f32.mrb[1].mxu1 }
  0xf9   :  { %v112_v39 = vadd.f32 %v162_v32, %v111_v37  ;;  %v132_v40 = vadd.f32 %v162_v32, %v131_v38 }
  0xfa   :  { %151 = vst [vmem:[%s401_s3 + $0x8] sm:$0xff] %v117_v35  ;;  %155 = vst [vmem:[%s401_s3 + $0x28] sm:$0xff] %v137_v36 }
  0xfb   :  { %150 = vst [vmem:[%s401_s3] sm:$0xff] %v112_v39  ;;  %154 = vst [vmem:[%s401_s3 + $0x20] sm:$0xff] %v132_v40  ;;  %v224_v41 = vpop.f32.mrb[2].mxu0  ;;  %v230_v42 = vpop.f32.mrb[2].mxu1 }
  0xfc   :  { %v127_v43 = vadd.f32 %v224_v41, %v162_v32  ;;  %v147_v44 = vadd.f32 %v230_v42, %v162_v32  ;;  %v121_v45 = vpop.f32.mrb[3].mxu0  ;;  %v141_v46 = vpop.f32.mrb[3].mxu1 }
  0xfd   :  { %v122_v47 = vadd.f32 %v162_v32, %v121_v45  ;;  %v142_v48 = vadd.f32 %v162_v32, %v141_v46 }
  0xfe   :  { %153 = vst [vmem:[%s401_s3 + $0x18] sm:$0xff] %v127_v43  ;;  %157 = vst [vmem:[%s401_s3 + $0x38] sm:$0xff] %v147_v44 }
  0xff   :  { %152 = vst [vmem:[%s401_s3 + $0x10] sm:$0xff] %v122_v47  ;;  %156 = vst [vmem:[%s401_s3 + $0x30] sm:$0xff] %v142_v48 }

// kernel: encoder_forward.4
= control target key start
LH: loop header
LB: loop body
LE: loop exit
PB: predicated region body
PF: predicated region fallthrough
CT: control target
= control target key end

     0   :  { %v2414_v3 = vmov 0.0|0.0   ;;  %v2415_v4 = vmov 0.0   ;;  %vm2416_vm0 = vmmov 0   ;;  %s3056_s1 = inlined_call_operand.vmem [shape: f32[128,384], index: 1, kind: input, shape index: {}]   ;;  %s3057_s0 = inlined_call_operand.vmem [shape: f32[8,8,384], index: 0, kind: input, shape index: {}]   ;;  %s3058_s2 = inlined_call_operand.vmem [shape: f32[1,128], index: 2, kind: input, shape index: {}]   ;;  %s3059_s3 = inlined_call_operand.vmem [shape: f32[8,8,128], index: 3, kind: output, shape index: {}]  }
   0x1   :  { %v20_v0 = vld [vmem:[%s3056_s1 + $0x8] sm:$0xff]  ;;  %v23_v1 = vld [vmem:[%s3056_s1 + $0x20] sm:$0xff]  ;;  %1915 = vmatprep.subr.bf16.mxu1 %v2414_v3  ;;  %142 = vmatprep.mubr.f32.mxu0 %v2415_v4  ;;  %v22_v6 = vld [vmem:[%s3056_s1 + $0x18] sm:$0xff] }
   0x2   :  { %v19_v2 = vld [vmem:[%s3056_s1] sm:$0xff]  ;;  %v2448_v5 = vpack.c.bf16 %v23_v1, %v20_v0  ;;  %v26_v7 = vld [vmem:[%s3056_s1 + $0x38] sm:$0xff]  ;;  %v29_v8 = vld [vmem:[%s3056_s1 + $0x50] sm:$0xff]  ;;  %1635 = vmatprep.mubr.msk.f32.mxu1 %vm2416_vm0, %v2415_v4 }
   0x3   :  { %v2461_v9 = vpack.c.bf16 %v22_v6, %v19_v2  ;;  %v2463_v10 = vpack.c.bf16 %v29_v8, %v26_v7  ;;  %v25_v11 = vld [vmem:[%s3056_s1 + $0x30] sm:$0xff]  ;;  %v28_v12 = vld [vmem:[%s3056_s1 + $0x48] sm:$0xff]  ;;  %v35_v14 = vld [vmem:[%s3056_s1 + $0x80] sm:$0xff] }
   0x4   :  { %v32_v13 = vld [vmem:[%s3056_s1 + $0x68] sm:$0xff]  ;;  %1884 = vmatprep.subr.bf16.mxu0 %v2448_v5  ;;  %v2479_v15 = vpack.c.bf16 %v28_v12, %v25_v11  ;;  %v31_v17 = vld [vmem:[%s3056_s1 + $0x60] sm:$0xff]  ;;  %v34_v18 = vld [vmem:[%s3056_s1 + $0x78] sm:$0xff] }
   0x5   :  { %1886 = vmatpush1.bf16.msra.mxu0 %v2461_v9  ;;  %v2482_v16 = vpack.c.bf16 %v35_v14, %v32_v13  ;;  %v38_v19 = vld [vmem:[%s3056_s1 + $0x98] sm:$0xff]  ;;  %v41_v20 = vld [vmem:[%s3056_s1 + $0xb0] sm:$0xff]  ;;  %v2497_v21 = vpack.c.bf16 %v34_v18, %v31_v17  ;;  %v40_v24 = vld [vmem:[%s3056_s1 + $0xa8] sm:$0xff] }
   0x6   :  { %1888 = vmatprep.subr.bf16.mxu0 %v2463_v10  ;;  %v37_v22 = vld [vmem:[%s3056_s1 + $0x90] sm:$0xff]  ;;  %v2503_v23 = vpack.c.bf16 %v41_v20, %v38_v19  ;;  %v24_v26 = vld [vmem:[%s3056_s1 + $0x28] sm:$0xff]  ;;  %v47_v28 = vld [vmem:[%s3056_s1 + $0xe0] sm:$0xff] }
   0x7   :  { %v21_v25 = vld [vmem:[%s3056_s1 + $0x10] sm:$0xff]  ;;  %v44_v27 = vld [vmem:[%s3056_s1 + $0xc8] sm:$0xff]  ;;  %v27_v30 = vld [vmem:[%s3056_s1 + $0x40] sm:$0xff]  ;;  %v2529_v32 = vpack.c.bf16 %v40_v24, %v37_v22 }
   0x8   :  { %v2520_v29 = vpack.c.bf16 %v24_v26, %v21_v25  ;;  %v30_v31 = vld [vmem:[%s3056_s1 + $0x58] sm:$0xff]  ;;  %v43_v33 = vld [vmem:[%s3056_s1 + $0xc0] sm:$0xff]  ;;  %v2538_v35 = vpack.c.bf16 %v47_v28, %v44_v27  ;;  %v33_v37 = vld [vmem:[%s3056_s1 + $0x70] sm:$0xff] }
   0x9   :  { %1890 = vmatpush1.bf16.msra.mxu0 %v2479_v15  ;;  %v2535_v34 = vpack.c.bf16 %v30_v31, %v27_v30  ;;  %v46_v36 = vld [vmem:[%s3056_s1 + $0xd8] sm:$0xff]  ;;  %v36_v38 = vld [vmem:[%s3056_s1 + $0x88] sm:$0xff]  ;;  %v53_v40 = vld [vmem:[%s3056_s1 + $0x110] sm:$0xff] }
   0xa   :  { %1892 = vmatprep.subr.bf16.mxu0 %v2482_v16  ;;  %1917 = vmatpush3.bf16.msra.mxu1 %v2520_v29  ;;  %v50_v39 = vld [vmem:[%s3056_s1 + $0xf8] sm:$0xff]  ;;  %v2557_v41 = vpack.c.bf16 %v46_v36, %v43_v33  ;;  %v49_v42 = vld [vmem:[%s3056_s1 + $0xf0] sm:$0xff]  ;;  %v2563_v43 = vpack.c.bf16 %v36_v38, %v33_v37  ;;  %v52_v45 = vld [vmem:[%s3056_s1 + $0x108] sm:$0xff] }
   0xb   :  { %1918 = vmatprep.subr.bf16.mxu1 %v2414_v3  ;;  %v2566_v44 = vpack.c.bf16 %v53_v40, %v50_v39  ;;  %v39_v46 = vld [vmem:[%s3056_s1 + $0xa0] sm:$0xff]  ;;  %v42_v47 = vld [vmem:[%s3056_s1 + $0xb8] sm:$0xff]  ;;  %v56_v48 = vld [vmem:[%s3056_s1 + $0x128] sm:$0xff]  ;;  %v2585_v50 = vpack.c.bf16 %v52_v45, %v49_v42 }
   0xc   :  { %v59_v49 = vld [vmem:[%s3056_s1 + $0x140] sm:$0xff]  ;;  %v2591_v52 = vpack.c.bf16 %v42_v47, %v39_v46  ;;  %v58_v54 = vld [vmem:[%s3056_s1 + $0x138] sm:$0xff]  ;;  %v45_v55 = vld [vmem:[%s3056_s1 + $0xd0] sm:$0xff] }
   0xd   :  { %1894 = vmatpush1.bf16.msra.mxu0 %v2497_v21  ;;  %v55_v51 = vld [vmem:[%s3056_s1 + $0x120] sm:$0xff]  ;;  %v2594_v53 = vpack.c.bf16 %v59_v49, %v56_v48  ;;  %v48_v56 = vld [vmem:[%s3056_s1 + $0xe8] sm:$0xff]  ;;  %v62_v57 = vld [vmem:[%s3056_s1 + $0x158] sm:$0xff] }
   0xe   :  { %1896 = vmatprep.subr.bf16.mxu0 %v2503_v23  ;;  %1920 = vmatpush3.bf16.msra.mxu1 %v2535_v34  ;;  %v65_v58 = vld [vmem:[%s3056_s1 + $0x170] sm:$0xff]  ;;  %v2613_v59 = vpack.c.bf16 %v58_v54, %v55_v51  ;;  %v2619_v61 = vpack.c.bf16 %v48_v56, %v45_v55  ;;  %v64_v63 = vld [vmem:[%s3056_s1 + $0x168] sm:$0xff]  ;;  %v51_v0 = vld [vmem:[%s3056_s1 + $0x100] sm:$0xff] }
   0xf   :  { %1921 = vmatprep.subr.bf16.mxu1 %v2414_v3  ;;  %v61_v60 = vld [vmem:[%s3056_s1 + $0x150] sm:$0xff]  ;;  %v2622_v62 = vpack.c.bf16 %v65_v58, %v62_v57  ;;  %v54_v1 = vld [vmem:[%s3056_s1 + $0x118] sm:$0xff]  ;;  %v60_v8 = vld [vmem:[%s3056_s1 + $0x148] sm:$0xff] }
  0x10   :  { %v2635_v2 = vpack.c.bf16 %v64_v63, %v61_v60  ;;  %v2638_v6 = vpack.c.bf16 %v54_v1, %v51_v0  ;;  %v57_v7 = vld [vmem:[%s3056_s1 + $0x130] sm:$0xff]  ;;  %v63_v12 = vld [vmem:[%s3056_s1 + $0x160] sm:$0xff]  ;;  %v66_v13 = vld [vmem:[%s3056_s1 + $0x178] sm:$0xff] }
  0x11   :  { %1898 = vmatpush1.bf16.msra.mxu0 %v2529_v32  ;;  %v2650_v11 = vpack.c.bf16 %v60_v8, %v57_v7  ;;  %v2662_v14 = vpack.c.bf16 %v66_v13, %v63_v12  ;;  %v75_v17 = vld [vmem:[%s3057_s0] sm:$0xff]  ;;  %v76_v24 = vld [vmem:[%s3057_s0 + $0x8] sm:$0xff]  ;;  %v77_v39 = vld [vmem:[%s3057_s0 + $0x10] sm:$0xff] }
  0x12   :  { %1900 = vmatprep.subr.bf16.mxu0 %v2538_v35  ;;  %1923 = vmatpush3.bf16.msra.mxu1 %v2563_v43  ;;  %v2712_v33 = vld [vmem:[%s3058_s2] ss:$0 sm:$0xff]  ;;  %v1425_v54 = vld [vmem:[%s3057_s0 + $0x18] sm:$0xff] }
  0x13   :  { %1924 = vmatprep.subr.bf16.mxu1 %v2414_v3  ;;  %v1426_v0 = vld [vmem:[%s3057_s0 + $0x20] sm:$0xff] }
  0x15   :  { %1902 = vmatpush1.bf16.msra.mxu0 %v2557_v41 }
  0x16   :  { %1904 = vmatprep.subr.bf16.mxu0 %v2566_v44  ;;  %1926 = vmatpush3.bf16.msra.mxu1 %v2591_v52 }
  0x17   :  { %1927 = vmatprep.subr.bf16.mxu1 %v2414_v3 }
  0x19   :  { %1906 = vmatpush1.bf16.msra.mxu0 %v2585_v50 }
  0x1a   :  { %1908 = vmatprep.subr.bf16.mxu0 %v2594_v53  ;;  %1929 = vmatpush3.bf16.msra.mxu1 %v2619_v61 }
  0x1b   :  { %1930 = vmatprep.subr.bf16.mxu1 %v2414_v3 }
  0x1d   :  { %1910 = vmatpush1.bf16.msra.mxu0 %v2613_v59 }
  0x1e   :  { %1912 = vmatprep.subr.bf16.mxu0 %v2622_v62  ;;  %1932 = vmatpush3.bf16.msra.mxu1 %v2638_v6 }
  0x1f   :  { %1933 = vmatprep.subr.bf16.mxu1 %v2414_v3 }
  0x21   :  { %1914 = vmatpush1.bf16.msra.mxu0 %v2635_v2 }
  0x22   :  { %1940 = vmatprep.subr.bf16.mxu0 %v2448_v5  ;;  %1935 = vmatpush3.bf16.msra.mxu1 %v2650_v11 }
  0x23   :  { %1936 = vmatprep.subr.bf16.mxu1 %v2414_v3 }
  0x24   :  { %143 = vmatmul.mubr.f32.vlgmr.msra.gmra.mrb[0].mxu0 %v2415_v4 }
  0x25   :  { %1942 = vmatpush1.bf16.msra.mxu0 %v2461_v9  ;;  %309 = vmatprep.mubr.f32.mxu0 %v2415_v4 }
  0x26   :  { %1944 = vmatprep.subr.bf16.mxu0 %v2463_v10  ;;  %1938 = vmatpush3.bf16.msra.mxu1 %v2662_v14 }
  0x27   :  { %1971 = vmatprep.subr.bf16.mxu1 %v2414_v3 }
  0x29   :  { %1946 = vmatpush1.bf16.msra.mxu0 %v2479_v15  ;;  %1636 = vmatmul.mubr.f32.vlgmr.msra.gmra.mrb[0].mxu1 %v2415_v4 }
  0x2a   :  { %1948 = vmatprep.subr.bf16.mxu0 %v2482_v16  ;;  %1973 = vmatpush3.bf16.msra.mxu1 %v2520_v29 }
  0x2b   :  { %1974 = vmatprep.subr.bf16.mxu1 %v2414_v3  ;;  %1670 = vmatprep.mubr.msk.f32.mxu1 %vm2416_vm0, %v2415_v4 }
  0x2d   :  { %1950 = vmatpush1.bf16.msra.mxu0 %v2497_v21 }
  0x2e   :  { %1952 = vmatprep.subr.bf16.mxu0 %v2503_v23  ;;  %1976 = vmatpush3.bf16.msra.mxu1 %v2535_v34 }
  0x2f   :  { %1977 = vmatprep.subr.bf16.mxu1 %v2414_v3 }
  0x31   :  { %1954 = vmatpush1.bf16.msra.mxu0 %v2529_v32 }
  0x32   :  { %1956 = vmatprep.subr.bf16.mxu0 %v2538_v35  ;;  %1979 = vmatpush3.bf16.msra.mxu1 %v2563_v43 }
  0x33   :  { %1980 = vmatprep.subr.bf16.mxu1 %v2414_v3 }
  0x35   :  { %1958 = vmatpush1.bf16.msra.mxu0 %v2557_v41 }
  0x36   :  { %1960 = vmatprep.subr.bf16.mxu0 %v2566_v44  ;;  %1982 = vmatpush3.bf16.msra.mxu1 %v2591_v52 }
  0x37   :  { %1983 = vmatprep.subr.bf16.mxu1 %v2414_v3 }
  0x39   :  { %1962 = vmatpush1.bf16.msra.mxu0 %v2585_v50 }
  0x3a   :  { %1964 = vmatprep.subr.bf16.mxu0 %v2594_v53  ;;  %1985 = vmatpush3.bf16.msra.mxu1 %v2619_v61 }
  0x3b   :  { %1986 = vmatprep.subr.bf16.mxu1 %v2414_v3 }
  0x3d   :  { %1966 = vmatpush1.bf16.msra.mxu0 %v2613_v59 }
  0x3e   :  { %1968 = vmatprep.subr.bf16.mxu0 %v2622_v62  ;;  %1988 = vmatpush3.bf16.msra.mxu1 %v2638_v6 }
  0x3f   :  { %1989 = vmatprep.subr.bf16.mxu1 %v2414_v3 }
  0x41   :  { %1970 = vmatpush1.bf16.msra.mxu0 %v2635_v2 }
  0x42   :  { %1996 = vmatprep.subr.bf16.mxu0 %v2448_v5  ;;  %1991 = vmatpush3.bf16.msra.mxu1 %v2650_v11 }
  0x43   :  { %1992 = vmatprep.subr.bf16.mxu1 %v2414_v3 }
  0x46   :  { %1994 = vmatpush3.bf16.msra.mxu1 %v2662_v14 }
  0x47   :  { %2027 = vmatprep.subr.bf16.mxu1 %v2414_v3 }
  0xf7   :  { %v144_v18 = vpop.f32.mrb[0].mxu0 }
  0xf8   :  { %v219_v19 = vadd.f32 %v144_v18, %v75_v17  ;;  %v146_v20 = vpop.f32.mrb[1].mxu0 }
  0xf9   :  { %v226_v26 = vadd.f32 %v146_v20, %v76_v24 }
  0xfa   :  { %v1423_v22 = vmul.f32 -1.442695, %v219_v19  ;;  %v1427_v19 = vld [vmem:[%s3057_s0 + $0x28] sm:$0xff] }
  0xfb   :  { %v1424_v28 = vmul.f32 -1.442695, %v226_v26 }
  0xfc   :  { %2334 = vpow2.f32 %v1423_v22  ;;  %v215_v25 = vpop.f32.mrb[0].mxu1 }
  0xfd   :  { %v1637_v27 = vpop.f32.mrb[1].mxu1  ;;  %2336 = vpow2.f32 %v1424_v28  ;;  %v233_v36 = vadd.f32 %v2712_v33, %v215_v25 }
 0x106   :  { %v2335_v30 = vpop.eup %2334 }
 0x107   :  { %v223_v31 = vadd.f32 1.0, %v2335_v30  ;;  %v2337_v37 = vpop.eup %2336 }
 0x108   :  { %v230_v42 = vadd.f32 1.0, %v2337_v37 }
 0x109   :  { %2338 = vrcp.f32 %v223_v31  ;;  %v1431_v31 = vld [vmem:[%s3057_s0 + $0x30] sm:$0xff] }
 0x113   :  { %v2339_v38 = vpop.eup %2338 }
 0x114   :  { %v234_v40 = vmul.f32 %v2339_v38, %v233_v36 }
 0x116   :  { %v235_v45 = vadd.f32 %v234_v40, %v77_v39 }
 0x118   :  { %2340 = vtanh.f32 %v235_v45  ;;  %v1432_v45 = vld [vmem:[%s3057_s0 + $0x38] sm:$0xff] }
 0x119   :  { %2342 = vrcp.f32 %v230_v42 }
 0x122   :  { %v2341_v46 = vpop.eup %2340 }
 0x123   :  { %v237_v47 = vsub.f32 0.0, %v2341_v46  ;;  %v2343_v48 = vpop.eup %2342 }
 0x125   :  { %v238_v49 = vmul.f32 %v2343_v48, %v237_v47 }
 0x127   :  { %v2718_v51 = vadd.f32 %v2341_v46, %v238_v49 }
 0x129   :  { %240 = vst [vmem:[%s3059_s3] sm:$0xff] %v2718_v51  ;;  %310 = vmatmul.mubr.f32.vlgmr.msra.gmra.mrb[2].mxu0 %v2718_v51  ;;  %1671 = vmatmul.mubr.f32.vlgmr.msra.gmra.mrb[2].mxu1 %v2718_v51 }
 0x12a   :  { %1998 = vmatpush1.bf16.msra.mxu0 %v2461_v9  ;;  %2029 = vmatpush3.bf16.msra.mxu1 %v2520_v29 }
 0x12b   :  { %2000 = vmatprep.subr.bf16.mxu0 %v2463_v10  ;;  %2030 = vmatprep.subr.bf16.mxu1 %v2414_v3 }
 0x12c   :  { %477 = vmatprep.mubr.f32.mxu0 %v2415_v4  ;;  %1705 = vmatprep.mubr.msk.f32.mxu1 %vm2416_vm0, %v2415_v4 }
 0x12e   :  { %2002 = vmatpush1.bf16.msra.mxu0 %v2479_v15  ;;  %2032 = vmatpush3.bf16.msra.mxu1 %v2535_v34 }
 0x12f   :  { %2004 = vmatprep.subr.bf16.mxu0 %v2482_v16  ;;  %2033 = vmatprep.subr.bf16.mxu1 %v2414_v3 }
 0x132   :  { %2006 = vmatpush1.bf16.msra.mxu0 %v2497_v21  ;;  %2035 = vmatpush3.bf16.msra.mxu1 %v2563_v43 }
 0x133   :  { %2008 = vmatprep.subr.bf16.mxu0 %v2503_v23  ;;  %2036 = vmatprep.subr.bf16.mxu1 %v2414_v3 }
 0x136   :  { %2010 = vmatpush1.bf16.msra.mxu0 %v2529_v32  ;;  %2038 = vmatpush3.bf16.msra.mxu1 %v2591_v52 }
 0x137   :  { %2012 = vmatprep.subr.bf16.mxu0 %v2538_v35  ;;  %2039 = vmatprep.subr.bf16.mxu1 %v2414_v3 }
 0x13a   :  { %2014 = vmatpush1.bf16.msra.mxu0 %v2557_v41  ;;  %2041 = vmatpush3.bf16.msra.mxu1 %v2619_v61 }
 0x13b   :  { %2016 = vmatprep.subr.bf16.mxu0 %v2566_v44  ;;  %2042 = vmatprep.subr.bf16.mxu1 %v2414_v3 }
 0x13e   :  { %2018 = vmatpush1.bf16.msra.mxu0 %v2585_v50  ;;  %2044 = vmatpush3.bf16.msra.mxu1 %v2638_v6 }
 0x13f   :  { %2020 = vmatprep.subr.bf16.mxu0 %v2594_v53  ;;  %2045 = vmatprep.subr.bf16.mxu1 %v2414_v3 }
 0x142   :  { %2022 = vmatpush1.bf16.msra.mxu0 %v2613_v59  ;;  %2047 = vmatpush3.bf16.msra.mxu1 %v2650_v11 }
 0x143   :  { %2024 = vmatprep.subr.bf16.mxu0 %v2622_v62  ;;  %2048 = vmatprep.subr.bf16.mxu1 %v2414_v3 }
 0x146   :  { %2026 = vmatpush1.bf16.msra.mxu0 %v2635_v2  ;;  %2050 = vmatpush3.bf16.msra.mxu1 %v2662_v14 }
 0x147   :  { %2052 = vmatprep.subr.bf16.mxu0 %v2448_v5  ;;  %2083 = vmatprep.subr.bf16.mxu1 %v2414_v3 }
 0x1fc   :  { %v311_v55 = vpop.f32.mrb[2].mxu0  ;;  %v382_v56 = vpop.f32.mrb[2].mxu1 }
 0x1fd   :  { %v386_v57 = vadd.f32 %v1425_v54, %v311_v55  ;;  %v313_v58 = vpop.f32.mrb[3].mxu0  ;;  %v1672_v60 = vpop.f32.mrb[3].mxu1  ;;  %v400_v17 = vadd.f32 %v2712_v33, %v382_v56  ;;  %v1433_v56 = vld [vmem:[%s3057_s0 + $0x40] sm:$0xff] }
 0x1fe   :  { %v393_v1 = vadd.f32 %v1426_v0, %v313_v58 }
 0x1ff   :  { %v1428_v63 = vmul.f32 -1.442695, %v386_v57 }
 0x200   :  { %v1429_v7 = vmul.f32 -1.442695, %v393_v1 }
 0x201   :  { %2344 = vpow2.f32 %v1428_v63 }
 0x202   :  { %2346 = vpow2.f32 %v1429_v7 }
 0x20b   :  { %v2345_v8 = vpop.eup %2344 }
 0x20c   :  { %v390_v12 = vadd.f32 1.0, %v2345_v8  ;;  %v2347_v13 = vpop.eup %2346 }
 0x20d   :  { %v397_v24 = vadd.f32 1.0, %v2347_v13 }
 0x20e   :  { %2348 = vrcp.f32 %v390_v12  ;;  %v1437_v12 = vld [vmem:[%s3057_s0 + $0x48] sm:$0xff] }
 0x218   :  { %v2349_v18 = vpop.eup %2348 }
 0x219   :  { %v401_v20 = vmul.f32 %v2349_v18, %v400_v17 }
 0x21b   :  { %v402_v22 = vadd.f32 %v1427_v19, %v401_v20 }
 0x21d   :  { %2350 = vtanh.f32 %v402_v22 }
 0x21e   :  { %2352 = vrcp.f32 %v397_v24  ;;  %v1438_v24 = vld [vmem:[%s3057_s0 + $0x50] sm:$0xff] }
 0x227   :  { %v2351_v25 = vpop.eup %2350 }
 0x228   :  { %v404_v26 = vsub.f32 %v2718_v51, %v2351_v25  ;;  %v2353_v27 = vpop.eup %2352 }
 0x22a   :  { %v405_v28 = vmul.f32 %v2353_v27, %v404_v26 }
 0x22c   :  { %v2772_v30 = vadd.f32 %v2351_v25, %v405_v28 }
 0x22e   :  { %1430 = vst [vmem:[%s3059_s3 + $0x8] sm:$0xff] %v2772_v30  ;;  %478 = vmatmul.mubr.f32.vlgmr.msra.gmra.mrb[4].mxu0 %v2772_v30  ;;  %1706 = vmatmul.mubr.f32.vlgmr.msra.gmra.mrb[4].mxu1 %v2772_v30 }
 0x22f   :  { %2054 = vmatpush1.bf16.msra.mxu0 %v2461_v9  ;;  %2085 = vmatpush3.bf16.msra.mxu1 %v2520_v29 }
 0x230   :  { %2056 = vmatprep.subr.bf16.mxu0 %v2463_v10  ;;  %2086 = vmatprep.subr.bf16.mxu1 %v2414_v3 }
 0x231   :  { %645 = vmatprep.mubr.f32.mxu0 %v2415_v4  ;;  %1740 = vmatprep.mubr.msk.f32.mxu1 %vm2416_vm0, %v2415_v4 }
 0x233   :  { %2058 = vmatpush1.bf16.msra.mxu0 %v2479_v15  ;;  %2088 = vmatpush3.bf16.msra.mxu1 %v2535_v34 }
 0x234   :  { %2060 = vmatprep.subr.bf16.mxu0 %v2482_v16  ;;  %2089 = vmatprep.subr.bf16.mxu1 %v2414_v3 }
 0x237   :  { %2062 = vmatpush1.bf16.msra.mxu0 %v2497_v21  ;;  %2091 = vmatpush3.bf16.msra.mxu1 %v2563_v43 }
 0x238   :  { %2064 = vmatprep.subr.bf16.mxu0 %v2503_v23  ;;  %2092 = vmatprep.subr.bf16.mxu1 %v2414_v3 }
 0x23b   :  { %2066 = vmatpush1.bf16.msra.mxu0 %v2529_v32  ;;  %2094 = vmatpush3.bf16.msra.mxu1 %v2591_v52 }
 0x23c   :  { %2068 = vmatprep.subr.bf16.mxu0 %v2538_v35  ;;  %2095 = vmatprep.subr.bf16.mxu1 %v2414_v3 }
 0x23f   :  { %2070 = vmatpush1.bf16.msra.mxu0 %v2557_v41  ;;  %2097 = vmatpush3.bf16.msra.mxu1 %v2619_v61 }
 0x240   :  { %2072 = vmatprep.subr.bf16.mxu0 %v2566_v44  ;;  %2098 = vmatprep.subr.bf16.mxu1 %v2414_v3 }
 0x243   :  { %2074 = vmatpush1.bf16.msra.mxu0 %v2585_v50  ;;  %2100 = vmatpush3.bf16.msra.mxu1 %v2638_v6 }
 0x244   :  { %2076 = vmatprep.subr.bf16.mxu0 %v2594_v53  ;;  %2101 = vmatprep.subr.bf16.mxu1 %v2414_v3 }
 0x247   :  { %2078 = vmatpush1.bf16.msra.mxu0 %v2613_v59  ;;  %2103 = vmatpush3.bf16.msra.mxu1 %v2650_v11 }
 0x248   :  { %2080 = vmatprep.subr.bf16.mxu0 %v2622_v62  ;;  %2104 = vmatprep.subr.bf16.mxu1 %v2414_v3 }
 0x24b   :  { %2082 = vmatpush1.bf16.msra.mxu0 %v2635_v2  ;;  %2106 = vmatpush3.bf16.msra.mxu1 %v2662_v14 }
 0x24c   :  { %2108 = vmatprep.subr.bf16.mxu0 %v2448_v5  ;;  %2139 = vmatprep.subr.bf16.mxu1 %v2414_v3 }
 0x301   :  { %v479_v36 = vpop.f32.mrb[4].mxu0  ;;  %v550_v37 = vpop.f32.mrb[4].mxu1 }
 0x302   :  { %v554_v38 = vadd.f32 %v1431_v31, %v479_v36  ;;  %v481_v39 = vpop.f32.mrb[5].mxu0  ;;  %v1707_v40 = vpop.f32.mrb[5].mxu1  ;;  %v568_v54 = vadd.f32 %v2712_v33, %v550_v37  ;;  %v1439_v37 = vld [vmem:[%s3057_s0 + $0x58] sm:$0xff] }
 0x303   :  { %v561_v46 = vadd.f32 %v1432_v45, %v481_v39 }
 0x304   :  { %v1434_v42 = vmul.f32 -1.442695, %v554_v38 }
 0x305   :  { %v1435_v47 = vmul.f32 -1.442695, %v561_v46 }
 0x306   :  { %2354 = vpow2.f32 %v1434_v42 }
 0x307   :  { %2356 = vpow2.f32 %v1435_v47 }
 0x310   :  { %v2355_v48 = vpop.eup %2354 }
 0x311   :  { %v558_v49 = vadd.f32 1.0, %v2355_v48  ;;  %v2357_v51 = vpop.eup %2356 }
 0x312   :  { %v565_v60 = vadd.f32 1.0, %v2357_v51 }
 0x313   :  { %2358 = vrcp.f32 %v558_v49  ;;  %v1443_v49 = vld [vmem:[%s3057_s0 + $0x60] sm:$0xff] }
 0x31d   :  { %v2359_v55 = vpop.eup %2358 }
 0x31e   :  { %v569_v57 = vmul.f32 %v2359_v55, %v568_v54 }
 0x320   :  { %v570_v58 = vadd.f32 %v1433_v56, %v569_v57 }
 0x322   :  { %2360 = vtanh.f32 %v570_v58 }
 0x323   :  { %2362 = vrcp.f32 %v565_v60  ;;  %v1444_v60 = vld [vmem:[%s3057_s0 + $0x68] sm:$0xff] }
 0x32c   :  { %v2361_v63 = vpop.eup %2360 }
 0x32d   :  { %v572_v0 = vsub.f32 %v2772_v30, %v2361_v63  ;;  %v2363_v1 = vpop.eup %2362 }
 0x32f   :  { %v573_v7 = vmul.f32 %v2363_v1, %v572_v0 }
 0x331   :  { %v2826_v8 = vadd.f32 %v2361_v63, %v573_v7 }
 0x333   :  { %1436 = vst [vmem:[%s3059_s3 + $0x10] sm:$0xff] %v2826_v8  ;;  %646 = vmatmul.mubr.f32.vlgmr.msra.gmra.mrb[6].mxu0 %v2826_v8  ;;  %1741 = vmatmul.mubr.f32.vlgmr.msra.gmra.mrb[6].mxu1 %v2826_v8 }
 0x334   :  { %2110 = vmatpush1.bf16.msra.mxu0 %v2461_v9  ;;  %2141 = vmatpush3.bf16.msra.mxu1 %v2520_v29 }
 0x335   :  { %2112 = vmatprep.subr.bf16.mxu0 %v2463_v10  ;;  %2142 = vmatprep.subr.bf16.mxu1 %v2414_v3 }
 0x336   :  { %813 = vmatprep.mubr.f32.mxu0 %v2415_v4  ;;  %1775 = vmatprep.mubr.msk.f32.mxu1 %vm2416_vm0, %v2415_v4 }
 0x338   :  { %2114 = vmatpush1.bf16.msra.mxu0 %v2479_v15  ;;  %2144 = vmatpush3.bf16.msra.mxu1 %v2535_v34 }
 0x339   :  { %2116 = vmatprep.subr.bf16.mxu0 %v2482_v16  ;;  %2145 = vmatprep.subr.bf16.mxu1 %v2414_v3 }
 0x33c   :  { %2118 = vmatpush1.bf16.msra.mxu0 %v2497_v21  ;;  %2147 = vmatpush3.bf16.msra.mxu1 %v2563_v43 }
 0x33d   :  { %2120 = vmatprep.subr.bf16.mxu0 %v2503_v23  ;;  %2148 = vmatprep.subr.bf16.mxu1 %v2414_v3 }
 0x340   :  { %2122 = vmatpush1.bf16.msra.mxu0 %v2529_v32  ;;  %2150 = vmatpush3.bf16.msra.mxu1 %v2591_v52 }
 0x341   :  { %2124 = vmatprep.subr.bf16.mxu0 %v2538_v35  ;;  %2151 = vmatprep.subr.bf16.mxu1 %v2414_v3 }
 0x344   :  { %2126 = vmatpush1.bf16.msra.mxu0 %v2557_v41  ;;  %2153 = vmatpush3.bf16.msra.mxu1 %v2619_v61 }
 0x345   :  { %2128 = vmatprep.subr.bf16.mxu0 %v2566_v44  ;;  %2154 = vmatprep.subr.bf16.mxu1 %v2414_v3 }
 0x348   :  { %2130 = vmatpush1.bf16.msra.mxu0 %v2585_v50  ;;  %2156 = vmatpush3.bf16.msra.mxu1 %v2638_v6 }
 0x349   :  { %2132 = vmatprep.subr.bf16.mxu0 %v2594_v53  ;;  %2157 = vmatprep.subr.bf16.mxu1 %v2414_v3 }
 0x34c   :  { %2134 = vmatpush1.bf16.msra.mxu0 %v2613_v59  ;;  %2159 = vmatpush3.bf16.msra.mxu1 %v2650_v11 }
 0x34d   :  { %2136 = vmatprep.subr.bf16.mxu0 %v2622_v62  ;;  %2160 = vmatprep.subr.bf16.mxu1 %v2414_v3 }
 0x350   :  { %2138 = vmatpush1.bf16.msra.mxu0 %v2635_v2  ;;  %2162 = vmatpush3.bf16.msra.mxu1 %v2662_v14 }
 0x351   :  { %2164 = vmatprep.subr.bf16.mxu0 %v2448_v5  ;;  %2195 = vmatprep.subr.bf16.mxu1 %v2414_v3 }
 0x406   :  { %v647_v13 = vpop.f32.mrb[6].mxu0  ;;  %v718_v17 = vpop.f32.mrb[6].mxu1 }
 0x407   :  { %v722_v18 = vadd.f32 %v1437_v12, %v647_v13  ;;  %v649_v19 = vpop.f32.mrb[7].mxu0  ;;  %v1742_v20 = vpop.f32.mrb[7].mxu1  ;;  %v736_v31 = vadd.f32 %v2712_v33, %v718_v17  ;;  %v1445_v17 = vld [vmem:[%s3057_s0 + $0x70] sm:$0xff] }
 0x408   :  { %v729_v25 = vadd.f32 %v1438_v24, %v649_v19 }
 0x409   :  { %v1440_v22 = vmul.f32 -1.442695, %v722_v18 }
 0x40a   :  { %v1441_v26 = vmul.f32 -1.442695, %v729_v25 }
 0x40b   :  { %2364 = vpow2.f32 %v1440_v22 }
 0x40c   :  { %2366 = vpow2.f32 %v1441_v26 }
 0x415   :  { %v2365_v27 = vpop.eup %2364 }
 0x416   :  { %v726_v28 = vadd.f32 1.0, %v2365_v27  ;;  %v2367_v30 = vpop.eup %2366 }
 0x417   :  { %v733_v40 = vadd.f32 1.0, %v2367_v30 }
 0x418   :  { %2368 = vrcp.f32 %v726_v28  ;;  %v1449_v28 = vld [vmem:[%s3057_s0 + $0x78] sm:$0xff] }
 0x422   :  { %v2369_v36 = vpop.eup %2368 }
 0x423   :  { %v737_v38 = vmul.f32 %v2369_v36, %v736_v31 }
 0x425   :  { %v738_v39 = vadd.f32 %v1439_v37, %v737_v38 }
 0x427   :  { %2370 = vtanh.f32 %v738_v39 }
 0x428   :  { %2372 = vrcp.f32 %v733_v40  ;;  %v1450_v40 = vld [vmem:[%s3057_s0 + $0x80] sm:$0xff] }
 0x431   :  { %v2371_v42 = vpop.eup %2370 }
 0x432   :  { %v740_v45 = vsub.f32 %v2826_v8, %v2371_v42  ;;  %v2373_v46 = vpop.eup %2372 }
 0x434   :  { %v741_v47 = vmul.f32 %v2373_v46, %v740_v45 }
 0x436   :  { %v2880_v48 = vadd.f32 %v2371_v42, %v741_v47 }
 0x438   :  { %1442 = vst [vmem:[%s3059_s3 + $0x18] sm:$0xff] %v2880_v48  ;;  %814 = vmatmul.mubr.f32.vlgmr.msra.gmra.mrb[8].mxu0 %v2880_v48  ;;  %1776 = vmatmul.mubr.f32.vlgmr.msra.gmra.mrb[8].mxu1 %v2880_v48 }
 0x439   :  { %2166 = vmatpush1.bf16.msra.mxu0 %v2461_v9  ;;  %2197 = vmatpush3.bf16.msra.mxu1 %v2520_v29 }
 0x43a   :  { %2168 = vmatprep.subr.bf16.mxu0 %v2463_v10  ;;  %2198 = vmatprep.subr.bf16.mxu1 %v2414_v3 }
 0x43b   :  { %981 = vmatprep.mubr.f32.mxu0 %v2415_v4  ;;  %1810 = vmatprep.mubr.msk.f32.mxu1 %vm2416_vm0, %v2415_v4 }
 0x43d   :  { %2170 = vmatpush1.bf16.msra.mxu0 %v2479_v15  ;;  %2200 = vmatpush3.bf16.msra.mxu1 %v2535_v34 }
 0x43e   :  { %2172 = vmatprep.subr.bf16.mxu0 %v2482_v16  ;;  %2201 = vmatprep.subr.bf16.mxu1 %v2414_v3 }
 0x441   :  { %2174 = vmatpush1.bf16.msra.mxu0 %v2497_v21  ;;  %2203 = vmatpush3.bf16.msra.mxu1 %v2563_v43 }
 0x442   :  { %2176 = vmatprep.subr.bf16.mxu0 %v2503_v23  ;;  %2204 = vmatprep.subr.bf16.mxu1 %v2414_v3 }
 0x445   :  { %2178 = vmatpush1.bf16.msra.mxu0 %v2529_v32  ;;  %2206 = vmatpush3.bf16.msra.mxu1 %v2591_v52 }
 0x446   :  { %2180 = vmatprep.subr.bf16.mxu0 %v2538_v35  ;;  %2207 = vmatprep.subr.bf16.mxu1 %v2414_v3 }
 0x449   :  { %2182 = vmatpush1.bf16.msra.mxu0 %v2557_v41  ;;  %2209 = vmatpush3.bf16.msra.mxu1 %v2619_v61 }
 0x44a   :  { %2184 = vmatprep.subr.bf16.mxu0 %v2566_v44  ;;  %2210 = vmatprep.subr.bf16.mxu1 %v2414_v3 }
 0x44d   :  { %2186 = vmatpush1.bf16.msra.mxu0 %v2585_v50  ;;  %2212 = vmatpush3.bf16.msra.mxu1 %v2638_v6 }
 0x44e   :  { %2188 = vmatprep.subr.bf16.mxu0 %v2594_v53  ;;  %2213 = vmatprep.subr.bf16.mxu1 %v2414_v3 }
 0x451   :  { %2190 = vmatpush1.bf16.msra.mxu0 %v2613_v59  ;;  %2215 = vmatpush3.bf16.msra.mxu1 %v2650_v11 }
 0x452   :  { %2192 = vmatprep.subr.bf16.mxu0 %v2622_v62  ;;  %2216 = vmatprep.subr.bf16.mxu1 %v2414_v3 }
 0x455   :  { %2194 = vmatpush1.bf16.msra.mxu0 %v2635_v2  ;;  %2218 = vmatpush3.bf16.msra.mxu1 %v2662_v14 }
 0x456   :  { %2220 = vmatprep.subr.bf16.mxu0 %v2448_v5  ;;  %2251 = vmatprep.subr.bf16.mxu1 %v2414_v3 }
 0x50b   :  { %v815_v51 = vpop.f32.mrb[8].mxu0  ;;  %v886_v54 = vpop.f32.mrb[8].mxu1 }
 0x50c   :  { %v890_v55 = vadd.f32 %v1443_v49, %v815_v51  ;;  %v817_v56 = vpop.f32.mrb[9].mxu0  ;;  %v1777_v57 = vpop.f32.mrb[9].mxu1  ;;  %v904_v12 = vadd.f32 %v2712_v33, %v886_v54  ;;  %v1451_v51 = vld [vmem:[%s3057_s0 + $0x88] sm:$0xff] }
 0x50d   :  { %v897_v63 = vadd.f32 %v1444_v60, %v817_v56 }
 0x50e   :  { %v1446_v58 = vmul.f32 -1.442695, %v890_v55 }
 0x50f   :  { %v1447_v0 = vmul.f32 -1.442695, %v897_v63 }
 0x510   :  { %2374 = vpow2.f32 %v1446_v58 }
 0x511   :  { %2376 = vpow2.f32 %v1447_v0 }
 0x51a   :  { %v2375_v1 = vpop.eup %2374 }
 0x51b   :  { %v894_v7 = vadd.f32 1.0, %v2375_v1  ;;  %v2377_v8 = vpop.eup %2376 }
 0x51c   :  { %v901_v20 = vadd.f32 1.0, %v2377_v8 }
 0x51d   :  { %2378 = vrcp.f32 %v894_v7 }
 0x527   :  { %v2379_v13 = vpop.eup %2378 }
 0x528   :  { %v905_v18 = vmul.f32 %v2379_v13, %v904_v12 }
 0x52a   :  { %v906_v19 = vadd.f32 %v1445_v17, %v905_v18  ;;  %v1462_v18 = vld [vmem:[%s3057_s0 + $0xb0] sm:$0xff] }
 0x52c   :  { %2380 = vtanh.f32 %v906_v19 }
 0x52d   :  { %2382 = vrcp.f32 %v901_v20 }
 0x536   :  { %v2381_v22 = vpop.eup %2380 }
 0x537   :  { %v908_v24 = vsub.f32 %v2880_v48, %v2381_v22  ;;  %v2383_v25 = vpop.eup %2382 }
 0x539   :  { %v909_v26 = vmul.f32 %v2383_v25, %v908_v24 }
 0x53b   :  { %v2934_v27 = vadd.f32 %v2381_v22, %v909_v26 }
 0x53d   :  { %1448 = vst [vmem:[%s3059_s3 + $0x20] sm:$0xff] %v2934_v27  ;;  %982 = vmatmul.mubr.f32.vlgmr.msra.gmra.mrb[10].mxu0 %v2934_v27  ;;  %1811 = vmatmul.mubr.f32.vlgmr.msra.gmra.mrb[10].mxu1 %v2934_v27 }
 0x53e   :  { %2222 = vmatpush1.bf16.msra.mxu0 %v2461_v9  ;;  %2253 = vmatpush3.bf16.msra.mxu1 %v2520_v29 }
 0x53f   :  { %2224 = vmatprep.subr.bf16.mxu0 %v2463_v10  ;;  %2254 = vmatprep.subr.bf16.mxu1 %v2414_v3 }
 0x540   :  { %1149 = vmatprep.mubr.f32.mxu0 %v2415_v4  ;;  %1845 = vmatprep.mubr.msk.f32.mxu1 %vm2416_vm0, %v2415_v4 }
 0x542   :  { %2226 = vmatpush1.bf16.msra.mxu0 %v2479_v15  ;;  %2256 = vmatpush3.bf16.msra.mxu1 %v2535_v34 }
 0x543   :  { %2228 = vmatprep.subr.bf16.mxu0 %v2482_v16  ;;  %2257 = vmatprep.subr.bf16.mxu1 %v2414_v3 }
 0x546   :  { %2230 = vmatpush1.bf16.msra.mxu0 %v2497_v21  ;;  %2259 = vmatpush3.bf16.msra.mxu1 %v2563_v43 }
 0x547   :  { %2232 = vmatprep.subr.bf16.mxu0 %v2503_v23  ;;  %2260 = vmatprep.subr.bf16.mxu1 %v2414_v3 }
 0x54a   :  { %2234 = vmatpush1.bf16.msra.mxu0 %v2529_v32  ;;  %2262 = vmatpush3.bf16.msra.mxu1 %v2591_v52 }
 0x54b   :  { %2236 = vmatprep.subr.bf16.mxu0 %v2538_v35  ;;  %2263 = vmatprep.subr.bf16.mxu1 %v2414_v3 }
 0x54e   :  { %2238 = vmatpush1.bf16.msra.mxu0 %v2557_v41  ;;  %2265 = vmatpush3.bf16.msra.mxu1 %v2619_v61 }
 0x54f   :  { %2240 = vmatprep.subr.bf16.mxu0 %v2566_v44  ;;  %2266 = vmatprep.subr.bf16.mxu1 %v2414_v3 }
 0x552   :  { %2242 = vmatpush1.bf16.msra.mxu0 %v2585_v50  ;;  %2268 = vmatpush3.bf16.msra.mxu1 %v2638_v6 }
 0x553   :  { %2244 = vmatprep.subr.bf16.mxu0 %v2594_v53  ;;  %2269 = vmatprep.subr.bf16.mxu1 %v2414_v3 }
 0x556   :  { %2246 = vmatpush1.bf16.msra.mxu0 %v2613_v59  ;;  %2271 = vmatpush3.bf16.msra.mxu1 %v2650_v11 }
 0x557   :  { %2248 = vmatprep.subr.bf16.mxu0 %v2622_v62  ;;  %2272 = vmatprep.subr.bf16.mxu1 %v2414_v3 }
 0x55a   :  { %2250 = vmatpush1.bf16.msra.mxu0 %v2635_v2  ;;  %2274 = vmatpush3.bf16.msra.mxu1 %v2662_v14 }
 0x55b   :  { %2276 = vmatprep.subr.bf16.mxu0 %v2448_v5  ;;  %2307 = vmatprep.subr.bf16.mxu1 %v2414_v3 }
 0x610   :  { %v983_v30 = vpop.f32.mrb[10].mxu0  ;;  %v1054_v31 = vpop.f32.mrb[10].mxu1 }
 0x611   :  { %v1058_v36 = vadd.f32 %v1449_v28, %v983_v30  ;;  %v985_v37 = vpop.f32.mrb[11].mxu0  ;;  %v1812_v38 = vpop.f32.mrb[11].mxu1  ;;  %v1072_v48 = vadd.f32 %v2712_v33, %v1054_v31  ;;  %v1463_v28 = vld [vmem:[%s3057_s0 + $0xb8] sm:$0xff] }
 0x612   :  { %v1065_v42 = vadd.f32 %v1450_v40, %v985_v37 }
 0x613   :  { %v1452_v39 = vmul.f32 -1.442695, %v1058_v36 }
 0x614   :  { %v1453_v45 = vmul.f32 -1.442695, %v1065_v42 }
 0x615   :  { %2384 = vpow2.f32 %v1452_v39 }
 0x616   :  { %2386 = vpow2.f32 %v1453_v45 }
 0x61f   :  { %v2385_v5 = vpop.eup %2384 }
 0x620   :  { %v1062_v46 = vadd.f32 1.0, %v2385_v5  ;;  %v2387_v47 = vpop.eup %2386 }
 0x621   :  { %v1069_v56 = vadd.f32 1.0, %v2387_v47 }
 0x622   :  { %2388 = vrcp.f32 %v1062_v46 }
 0x62c   :  { %v2389_v49 = vpop.eup %2388 }
 0x62d   :  { %v1073_v54 = vmul.f32 %v2389_v49, %v1072_v48 }
 0x62f   :  { %v1074_v55 = vadd.f32 %v1451_v51, %v1073_v54 }
 0x631   :  { %2390 = vtanh.f32 %v1074_v55 }
 0x632   :  { %2392 = vrcp.f32 %v1069_v56 }
 0x63b   :  { %v2391_v57 = vpop.eup %2390 }
 0x63c   :  { %v1076_v58 = vsub.f32 %v2934_v27, %v2391_v57  ;;  %v2393_v60 = vpop.eup %2392 }
 0x63e   :  { %v1077_v63 = vmul.f32 %v2393_v60, %v1076_v58 }
 0x640   :  { %v2988_v0 = vadd.f32 %v2391_v57, %v1077_v63 }
 0x642   :  { %1454 = vst [vmem:[%s3059_s3 + $0x28] sm:$0xff] %v2988_v0  ;;  %1150 = vmatmul.mubr.f32.vlgmr.msra.gmra.mrb[12].mxu0 %v2988_v0  ;;  %1846 = vmatmul.mubr.f32.vlgmr.msra.gmra.mrb[12].mxu1 %v2988_v0 }
 0x643   :  { %2278 = vmatpush1.bf16.msra.mxu0 %v2461_v9  ;;  %2309 = vmatpush3.bf16.msra.mxu1 %v2520_v29  ;;  %v1456_v29 = vld [vmem:[%s3057_s0 + $0x98] sm:$0xff] }
 0x644   :  { %2280 = vmatprep.subr.bf16.mxu0 %v2463_v10  ;;  %2310 = vmatprep.subr.bf16.mxu1 %v2414_v3 }
 0x645   :  { %1317 = vmatprep.mubr.f32.mxu0 %v2415_v4  ;;  %1880 = vmatprep.mubr.msk.f32.mxu1 %vm2416_vm0, %v2415_v4  ;;  %v1455_v4 = vld [vmem:[%s3057_s0 + $0x90] sm:$0xff] }
 0x647   :  { %2282 = vmatpush1.bf16.msra.mxu0 %v2479_v15  ;;  %2312 = vmatpush3.bf16.msra.mxu1 %v2535_v34 }
 0x648   :  { %2284 = vmatprep.subr.bf16.mxu0 %v2482_v16  ;;  %2313 = vmatprep.subr.bf16.mxu1 %v2414_v3 }
 0x64b   :  { %2286 = vmatpush1.bf16.msra.mxu0 %v2497_v21  ;;  %2315 = vmatpush3.bf16.msra.mxu1 %v2563_v43 }
 0x64c   :  { %2288 = vmatprep.subr.bf16.mxu0 %v2503_v23  ;;  %2316 = vmatprep.subr.bf16.mxu1 %v2414_v3 }
 0x64f   :  { %2290 = vmatpush1.bf16.msra.mxu0 %v2529_v32  ;;  %2318 = vmatpush3.bf16.msra.mxu1 %v2591_v52 }
 0x650   :  { %2292 = vmatprep.subr.bf16.mxu0 %v2538_v35  ;;  %2319 = vmatprep.subr.bf16.mxu1 %v2414_v3 }
 0x653   :  { %2294 = vmatpush1.bf16.msra.mxu0 %v2557_v41  ;;  %2321 = vmatpush3.bf16.msra.mxu1 %v2619_v61 }
 0x654   :  { %2296 = vmatprep.subr.bf16.mxu0 %v2566_v44  ;;  %2322 = vmatprep.subr.bf16.mxu1 %v2414_v3 }
 0x657   :  { %2298 = vmatpush1.bf16.msra.mxu0 %v2585_v50  ;;  %2324 = vmatpush3.bf16.msra.mxu1 %v2638_v6  ;;  %v1457_v50 = vld [vmem:[%s3057_s0 + $0xa0] sm:$0xff] }
 0x658   :  { %2300 = vmatprep.subr.bf16.mxu0 %v2594_v53  ;;  %2325 = vmatprep.subr.bf16.mxu1 %v2414_v3 }
 0x65b   :  { %2302 = vmatpush1.bf16.msra.mxu0 %v2613_v59  ;;  %2327 = vmatpush3.bf16.msra.mxu1 %v2650_v11 }
 0x65c   :  { %2304 = vmatprep.subr.bf16.mxu0 %v2622_v62  ;;  %2328 = vmatprep.subr.bf16.mxu1 %v2414_v3 }
 0x65f   :  { %2306 = vmatpush1.bf16.msra.mxu0 %v2635_v2  ;;  %2330 = vmatpush3.bf16.msra.mxu1 %v2662_v14  ;;  %v1461_v14 = vld [vmem:[%s3057_s0 + $0xa8] sm:$0xff] }
 0x715   :  { %v1151_v9 = vpop.f32.mrb[12].mxu0  ;;  %v1222_v10 = vpop.f32.mrb[12].mxu1 }
 0x716   :  { %v1226_v15 = vadd.f32 %v1455_v4, %v1151_v9  ;;  %v1153_v16 = vpop.f32.mrb[13].mxu0  ;;  %v1847_v21 = vpop.f32.mrb[13].mxu1  ;;  %v1240_v43 = vadd.f32 %v2712_v33, %v1222_v10 }
 0x717   :  { %v1233_v3 = vadd.f32 %v1456_v29, %v1153_v16 }
 0x718   :  { %v1458_v23 = vmul.f32 -1.442695, %v1226_v15 }
 0x719   :  { %v1459_v32 = vmul.f32 -1.442695, %v1233_v3 }
 0x71a   :  { %2394 = vpow2.f32 %v1458_v23 }
 0x71b   :  { %2396 = vpow2.f32 %v1459_v32 }
 0x724   :  { %v2395_v34 = vpop.eup %2394 }
 0x725   :  { %v1230_v35 = vadd.f32 1.0, %v2395_v34  ;;  %v2397_v41 = vpop.eup %2396 }
 0x726   :  { %v1237_v59 = vadd.f32 1.0, %v2397_v41 }
 0x727   :  { %2398 = vrcp.f32 %v1230_v35 }
 0x731   :  { %v2399_v44 = vpop.eup %2398 }
 0x732   :  { %v1241_v52 = vmul.f32 %v2399_v44, %v1240_v43 }
 0x734   :  { %v1242_v53 = vadd.f32 %v1457_v50, %v1241_v52 }
 0x736   :  { %2400 = vtanh.f32 %v1242_v53 }
 0x737   :  { %2402 = vrcp.f32 %v1237_v59 }
 0x740   :  { %v2401_v61 = vpop.eup %2400 }
 0x741   :  { %v1244_v62 = vsub.f32 %v2988_v0, %v2401_v61  ;;  %v2403_v2 = vpop.eup %2402 }
 0x743   :  { %v1245_v6 = vmul.f32 %v2403_v2, %v1244_v62 }
 0x745   :  { %v1246_v11 = vadd.f32 %v2401_v61, %v1245_v6 }
 0x747   :  { %1460 = vst [vmem:[%s3059_s3 + $0x30] sm:$0xff] %v1246_v11  ;;  %1318 = vmatmul.mubr.f32.vlgmr.msra.gmra.mrb[14].mxu0 %v1246_v11  ;;  %1881 = vmatmul.mubr.f32.vlgmr.msra.gmra.mrb[14].mxu1 %v1246_v11 }
 0x81a   :  { %v1319_v1 = vpop.f32.mrb[14].mxu0  ;;  %v1390_v7 = vpop.f32.mrb[14].mxu1 }
 0x81b   :  { %v1394_v8 = vadd.f32 %v1461_v14, %v1319_v1  ;;  %v1321_v12 = vpop.f32.mrb[15].mxu0  ;;  %v1882_v13 = vpop.f32.mrb[15].mxu1  ;;  %v1408_v26 = vadd.f32 %v2712_v33, %v1390_v7 }
 0x81c   :  { %v1401_v19 = vadd.f32 %v1462_v18, %v1321_v12 }
 0x81d   :  { %v1464_v17 = vmul.f32 -1.442695, %v1394_v8 }
 0x81e   :  { %v1465_v20 = vmul.f32 -1.442695, %v1401_v19 }
 0x81f   :  { %2404 = vpow2.f32 %v1464_v17 }
 0x820   :  { %2406 = vpow2.f32 %v1465_v20 }
 0x829   :  { %v2405_v22 = vpop.eup %2404 }
 0x82a   :  { %v1398_v24 = vadd.f32 1.0, %v2405_v22  ;;  %v2407_v25 = vpop.eup %2406 }
 0x82b   :  { %v1405_v36 = vadd.f32 1.0, %v2407_v25 }
 0x82c   :  { %2408 = vrcp.f32 %v1398_v24 }
 0x836   :  { %v2409_v27 = vpop.eup %2408 }
 0x837   :  { %v1409_v30 = vmul.f32 %v2409_v27, %v1408_v26 }
 0x839   :  { %v1410_v31 = vadd.f32 %v1463_v28, %v1409_v30 }
 0x83b   :  { %2410 = vtanh.f32 %v1410_v31 }
 0x83c   :  { %2412 = vrcp.f32 %v1405_v36 }
 0x845   :  { %v2411_v37 = vpop.eup %2410 }
 0x846   :  { %v1412_v38 = vsub.f32 %v1246_v11, %v2411_v37  ;;  %v2413_v39 = vpop.eup %2412 }
 0x848   :  { %v1413_v40 = vmul.f32 %v2413_v39, %v1412_v38 }
 0x84a   :  { %v1414_v42 = vadd.f32 %v2411_v37, %v1413_v40 }
 0x84c   :  { %1466 = vst [vmem:[%s3059_s3 + $0x38] sm:$0xff] %v1414_v42 }

</bundles_post_ra>
